<compile_context>
chip_gen: v5e
topology: v5e:2x2
jax: 0.10.0
libtpu: 0.0.40
codegen_flags: <defaults>
</compile_context>

<pallas_src>
import math

import jax
import jax.numpy as jnp
from jax.experimental import pallas as pl
from jax.experimental.pallas import tpu as pltpu


def _make_kernel(n_head, d_head, S, seq_tile, prologue_chunk, ffn_chunk, eps):
    E = n_head * d_head

    def kernel(x_ref,                    # (1, S, E) f32   full sequence of this batch
               g1_ref, b1_ref,           # (1, E) f32      LayerNorm1 gamma/beta
               wqkv_ref,                 # (E, 3E) bf16    fused QKV (Q cols pre-scaled)
               wo_ref, bo_ref,           # (E, E) bf16, (1, E) f32
               g2_ref, b2_ref,           # (1, E) f32      LayerNorm2 gamma/beta
               w1_ref, b1f_ref,          # (E, F) bf16, (1, F) f32
               w2_ref, b2f_ref,          # (F, E) bf16, (1, E) f32
               out_ref,                  # (1, TQ, E)
               q_s, k_s, v_s, acc_s):    # VMEM scratch
        qt = pl.program_id(1)

        # ---- once per batch: LayerNorm1 + fused QKV for the full sequence, chunked ----
        @pl.when(qt == 0)
        def _prologue():
            g1 = g1_ref[0]
            b1 = b1_ref[0]

            def body(c, carry):
                r0 = pl.multiple_of(c * prologue_chunk, prologue_chunk)
                rows = pl.ds(r0, prologue_chunk)
                xc = x_ref[0, rows, :].astype(jnp.float32)               # (chunk, E)
                mu = jnp.mean(xc, axis=-1, keepdims=True)
                var = jnp.mean(jnp.square(xc - mu), axis=-1, keepdims=True)
                xn = (xc - mu) * jax.lax.rsqrt(var + eps)
                xn = xn * g1 + b1
                qkv = jnp.dot(xn.astype(jnp.bfloat16), wqkv_ref[...],
                              preferred_element_type=jnp.float32)        # (chunk, 3E)
                q_s[rows, :] = qkv[:, :E].astype(jnp.bfloat16)           # pre-scaled Q
                k_s[rows, :] = qkv[:, E:2 * E].astype(jnp.bfloat16)
                v_s[rows, :] = qkv[:, 2 * E:].astype(jnp.bfloat16)
                return carry

            jax.lax.fori_loop(0, S // prologue_chunk, body, None)

        row0 = pl.multiple_of(qt * seq_tile, seq_tile)
        x_tile = x_ref[0, pl.ds(row0, seq_tile), :].astype(jnp.float32)  # (TQ, E)

        # ---- attention for this query tile ----
        q_tile = q_s[pl.ds(row0, seq_tile), :]                           # (TQ, E) bf16
        k_all = k_s[...]                                                 # (S, E)  bf16
        v_all = v_s[...]                                                 # (S, E)  bf16
        dn = (((1,), (1,)), ((), ()))                                    # contract d_head
        # TODO(synk): d_head < 128 under-fills the MXU K dim for the QK / PV matmuls
        # (structural ceiling); head packing with a block-diagonal mask not implemented.
        # TODO(synk): if bundle dumps show masked vst on the d_head-lane acc_s writes,
        # fold Wo into this loop (acc += (p @ v_h) @ wo[h-slice, :]) instead.
        for h in range(n_head):                                          # static unroll
            sl = slice(h * d_head, (h + 1) * d_head)
            s = jax.lax.dot_general(q_tile[:, sl], k_all[:, sl], dn,
                                    preferred_element_type=jnp.float32)  # (TQ, S)
            s = s - jnp.max(s, axis=-1, keepdims=True)
            p = jnp.exp(s)                                               # unnormalized
            denom = jnp.sum(p, axis=-1, keepdims=True)
            o_h = jnp.dot(p.astype(jnp.bfloat16), v_all[:, sl],
                          preferred_element_type=jnp.float32)            # (TQ, d_head)
            # deferred softmax normalization: scale the small head output, not p
            acc_s[:, sl] = o_h * pl.reciprocal(denom, approx=True)

        attn = jnp.dot(acc_s[...].astype(jnp.bfloat16), wo_ref[...],
                       preferred_element_type=jnp.float32) + bo_ref[0]
        # TODO(synk): dropout layers are identity (inference / eval mode); no RNG masking.
        x1 = x_tile + attn                                               # residual 1

        # ---- LayerNorm2 + FFN (chunked over hidden dim F, f32 VMEM accumulator) ----
        mu2 = jnp.mean(x1, axis=-1, keepdims=True)
        var2 = jnp.mean(jnp.square(x1 - mu2), axis=-1, keepdims=True)
        xn2 = (x1 - mu2) * jax.lax.rsqrt(var2 + eps)
        xn2 = (xn2 * g2_ref[0] + b2_ref[0]).astype(jnp.bfloat16)

        F = w1_ref.shape[1]
        # acc_s is dead after the Wo matmul above; reuse it as the FFN accumulator so
        # the chunk loop does not carry a (TQ, E) f32 register accumulator.
        for idx, f0 in enumerate(range(0, F, ffn_chunk)):                # static unroll
            f1 = min(f0 + ffn_chunk, F)
            h1 = jnp.dot(xn2, w1_ref[:, f0:f1],
                         preferred_element_type=jnp.float32) + b1f_ref[0, f0:f1]
            h1 = jnp.maximum(h1, 0.0).astype(jnp.bfloat16)
            part = jnp.dot(h1, w2_ref[f0:f1, :],
                           preferred_element_type=jnp.float32)
            if idx == 0:
                acc_s[...] = part
            else:
                acc_s[...] += part

        out_ref[0] = (x1 + acc_s[...] + b2f_ref[0]).astype(out_ref.dtype)  # residual 2

    return kernel


def _default_vmem_limit_bytes():
    """~3/4 of physical VMEM: ~96 MiB on v5e/v6e (128 MiB), ~48 MiB on v7x (64 MiB)."""
    try:
        info = pltpu.get_tpu_info()
        cap = getattr(info, "vmem_capacity_bytes", None)
        if cap:
            return min(int(cap) * 3 // 4, 112 * 1024 * 1024)
    except Exception:
        pass
    return 48 * 1024 * 1024


def _largest_divisor_tile(n, candidates=(512, 256, 128, 64, 32, 16, 8)):
    return next((t for t in candidates if n % t == 0), n)


def trans_block(x, params, n_head, *, seq_tile=None, prologue_chunk=None,
                ffn_chunk=None, eps=1e-5, vmem_limit_bytes=None):
    B, S, E = x.shape
    if E % n_head != 0:
        raise ValueError("embed_dim must be divisible by n_head")
    d_head = E // n_head
    F = params["w1"].shape[1]

    if seq_tile is None:
        seq_tile = _largest_divisor_tile(S)
    if S % seq_tile != 0:
        raise ValueError("seq_tile must divide the sequence length")
    if prologue_chunk is None:
        prologue_chunk = _largest_divisor_tile(S)
    if S % prologue_chunk != 0:
        raise ValueError("prologue_chunk must divide the sequence length")
    if ffn_chunk is None:
        ffn_chunk = 512 if F % 512 == 0 else F
    if vmem_limit_bytes is None:
        vmem_limit_bytes = _default_vmem_limit_bytes()

    kernel = _make_kernel(n_head, d_head, S, seq_tile, prologue_chunk, ffn_chunk, eps)

    def const_spec(shape):
        # Constant index_map: the block never changes across grid steps, so single-buffer
        # it (Buffered(1)) -- default double-buffering would just double weight residency.
        zeros = (0,) * len(shape)
        return pl.BlockSpec(shape, lambda b, qt: zeros, pipeline_mode=pl.Buffered(1))

    in_specs = [
        # x keeps default double-buffering so the next batch's sequence prefetches
        # across the batch boundary.  TODO(synk): Buffered(1) here too if VMEM-tight
        # on v7x; for huge E/F, stream W1/W2 via pl.ANY + emit_pipeline instead.
        pl.BlockSpec((1, S, E), lambda b, qt: (b, 0, 0)),   # x (full sequence per batch)
        const_spec((1, E)), const_spec((1, E)),             # gamma1, beta1
        const_spec((E, 3 * E)),                             # fused Wqkv (bf16)
        const_spec((E, E)), const_spec((1, E)),             # Wo (bf16), bo
        const_spec((1, E)), const_spec((1, E)),             # gamma2, beta2
        const_spec((E, F)), const_spec((1, F)),             # W1 (bf16), b1
        const_spec((F, E)), const_spec((1, E)),             # W2 (bf16), b2
    ]
    out_specs = pl.BlockSpec((1, seq_tile, E), lambda b, qt: (b, qt, 0))
    scratch_shapes = [
        pltpu.VMEM((S, E), jnp.bfloat16),        # Q (pre-scaled), full sequence, bf16
        pltpu.VMEM((S, E), jnp.bfloat16),        # K
        pltpu.VMEM((S, E), jnp.bfloat16),        # V
        pltpu.VMEM((seq_tile, E), jnp.float32),  # head-merge scratch, reused as FFN acc
    ]

    return pl.pallas_call(
        kernel,
        out_shape=jax.ShapeDtypeStruct((B, S, E), x.dtype),
        grid_spec=pltpu.PrefetchScalarGridSpec(
            num_scalar_prefetch=0,
            grid=(B, S // seq_tile),
            in_specs=in_specs,
            out_specs=out_specs,
            scratch_shapes=scratch_shapes,
        ),
        compiler_params=pltpu.CompilerParams(
            # TODO(synk): for B=1 serving on v7x, hoist LN1+QKV to its own pallas_call
            # so the seq-tile axis can be marked "parallel" across both TensorCores.
            dimension_semantics=("parallel", "arbitrary"),
            vmem_limit_bytes=vmem_limit_bytes,
        ),
    )(x,
      params["gamma1"], params["beta1"],
      params["w_qkv"],
      params["wo"], params["bo"],
      params["gamma2"], params["beta2"],
      params["w1"], params["b1"],
      params["w2"], params["b2"])


# ----------------------------- parameters & reference -----------------------------

def init_params(key, embed_dim, r_ff):
    """PyTorch-equivalent parameters; linear weights stored as (in_dim, out_dim)."""
    E = embed_dim
    F = E * r_ff
    ks = jax.random.split(key, 6)

    def xavier(k, fan_in, fan_out, shape):
        lim = math.sqrt(6.0 / (fan_in + fan_out))
        return jax.random.uniform(k, shape, jnp.float32, -lim, lim)

    return {
        "gamma1": jnp.ones((E,), jnp.float32),
        "beta1": jnp.zeros((E,), jnp.float32),
        "wq": xavier(ks[0], E, E, (E, E)),
        "wk": xavier(ks[1], E, E, (E, E)),
        "wv": xavier(ks[2], E, E, (E, E)),
        "wo": xavier(ks[3], E, E, (E, E)),
        "bo": jnp.zeros((E,), jnp.float32),
        "gamma2": jnp.ones((E,), jnp.float32),
        "beta2": jnp.zeros((E,), jnp.float32),
        "w1": jax.random.normal(ks[4], (E, F), jnp.float32) * math.sqrt(2.0 / E),
        "b1": jnp.zeros((F,), jnp.float32),
        "w2": xavier(ks[5], F, E, (F, E)),
        "b2": jnp.zeros((E,), jnp.float32),
    }


def prepare_kernel_params(p, n_head):
    """Fuse QKV, fold the 1/sqrt(d_head) scale into Wq, cast matmul weights to bf16."""
    E = p["wq"].shape[0]
    F = p["w1"].shape[1]
    scale = 1.0 / math.sqrt(E // n_head)
    w_qkv = jnp.concatenate([p["wq"] * scale, p["wk"], p["wv"]], axis=1)  # (E, 3E)
    return {
        "gamma1": p["gamma1"].reshape(1, E),
        "beta1": p["beta1"].reshape(1, E),
        "w_qkv": w_qkv.astype(jnp.bfloat16),
        "wo": p["wo"].astype(jnp.bfloat16),
        "bo": p["bo"].reshape(1, E),
        "gamma2": p["gamma2"].reshape(1, E),
        "beta2": p["beta2"].reshape(1, E),
        "w1": p["w1"].astype(jnp.bfloat16),
        "b1": p["b1"].reshape(1, F),
        "w2": p["w2"].astype(jnp.bfloat16),
        "b2": p["b2"].reshape(1, E),
    }


def reference_trans_block(x, p, n_head, eps=1e-5):
    """Pure-f32 JAX mirror of the PyTorch TransBlock (eval mode)."""
    B, S, E = x.shape
    d = E // n_head
    scaling = 1.0 / math.sqrt(d)

    def ln(z, g, b):
        m = jnp.mean(z, axis=-1, keepdims=True)
        v = jnp.mean((z - m) ** 2, axis=-1, keepdims=True)
        return (z - m) / jnp.sqrt(v + eps) * g + b

    xn = ln(x, p["gamma1"], p["beta1"])
    q = (xn @ p["wq"]).reshape(B, S, n_head, d) * scaling
    k = (xn @ p["wk"]).reshape(B, S, n_head, d)
    v = (xn @ p["wv"]).reshape(B, S, n_head, d)
    s = jnp.einsum("bqhd,bkhd->bhqk", q, k)
    w = jax.nn.softmax(s, axis=-1)
    attn = jnp.einsum("bhqk,bkhd->bqhd", w, v).reshape(B, S, E)
    attn = attn @ p["wo"] + p["bo"]
    x = x + attn
    xn2 = ln(x, p["gamma2"], p["beta2"])
    h1 = jnp.maximum(xn2 @ p["w1"] + p["b1"], 0.0)
    return x + h1 @ p["w2"] + p["b2"]


if __name__ == "__main__":
    # Small but lane-dense shapes: batch=2, seq=32, embed=128 (4 heads x 32), r_ff=4.
    B, S, E, n_head, r_ff = 2, 32, 128, 4, 4
    key = jax.random.PRNGKey(0)
    kx, kp = jax.random.split(key)
    x = jax.random.normal(kx, (B, S, E), jnp.float32)

    torch_params = init_params(kp, E, r_ff)
    kparams = prepare_kernel_params(torch_params, n_head)

    # seq_tile=16 / ffn_chunk=256 exercise the multi-tile seq path and the FFN-chunk loop
    # (16-row tiles keep bf16 Q-scratch sublane slices aligned to the (16,128) packing).
    out = trans_block(x, kparams, n_head, seq_tile=16, ffn_chunk=256)
    out = jax.block_until_ready(out)

    ref = reference_trans_block(x, torch_params, n_head)
    # bf16 matmul weights/activations + approx softmax reciprocal => loosened tolerance.
    if not jnp.allclose(out, ref, atol=1e-1, rtol=1e-1):
        err = float(jnp.max(jnp.abs(out - ref)))
        raise AssertionError(f"Pallas kernel output mismatch vs JAX reference (max abs err {err:.4f})")
    print("KERNEL_OK")
</pallas_src>

<mosaic_0001>
module attributes {stable_mosaic.version = 11 : i64} {
  func.func @kernel(%arg0: i32, %arg1: i32, %arg2: memref<1x32x128xf32, #tpu.memory_space<vmem>>, %arg3: memref<1x128xf32, #tpu.memory_space<vmem>>, %arg4: memref<1x128xf32, #tpu.memory_space<vmem>>, %arg5: memref<128x384xbf16, #tpu.memory_space<vmem>>, %arg6: memref<128x128xbf16, #tpu.memory_space<vmem>>, %arg7: memref<1x128xf32, #tpu.memory_space<vmem>>, %arg8: memref<1x128xf32, #tpu.memory_space<vmem>>, %arg9: memref<1x128xf32, #tpu.memory_space<vmem>>, %arg10: memref<128x512xbf16, #tpu.memory_space<vmem>>, %arg11: memref<1x512xf32, #tpu.memory_space<vmem>>, %arg12: memref<512x128xbf16, #tpu.memory_space<vmem>>, %arg13: memref<1x128xf32, #tpu.memory_space<vmem>>, %arg14: memref<1x16x128xf32, #tpu.memory_space<vmem>>, %arg15: memref<32x128xbf16, #tpu.memory_space<vmem>>, %arg16: memref<32x128xbf16, #tpu.memory_space<vmem>>, %arg17: memref<32x128xbf16, #tpu.memory_space<vmem>>, %arg18: memref<16x128xf32, #tpu.memory_space<vmem>>) attributes {dimension_semantics = [#tpu.dimension_semantics<parallel>, #tpu.dimension_semantics<arbitrary>], iteration_bounds = array<i64: 2, 2>, scalar_prefetch = 0 : i64, scratch_operands = 4 : i64, tpu.core_type = #tpu.core_type<tc>, window_params = [{transform_indices = @transform_0, window_bounds = array<i64: 1, 32, 128>}, {pipeline_mode = #tpu.pipeline_mode<synchronous>, transform_indices = @transform_1, window_bounds = array<i64: 1, 128>}, {pipeline_mode = #tpu.pipeline_mode<synchronous>, transform_indices = @transform_2, window_bounds = array<i64: 1, 128>}, {pipeline_mode = #tpu.pipeline_mode<synchronous>, transform_indices = @transform_3, window_bounds = array<i64: 128, 384>}, {pipeline_mode = #tpu.pipeline_mode<synchronous>, transform_indices = @transform_4, window_bounds = array<i64: 128, 128>}, {pipeline_mode = #tpu.pipeline_mode<synchronous>, transform_indices = @transform_5, window_bounds = array<i64: 1, 128>}, {pipeline_mode = #tpu.pipeline_mode<synchronous>, transform_indices = @transform_6, window_bounds = array<i64: 1, 128>}, {pipeline_mode = #tpu.pipeline_mode<synchronous>, transform_indices = @transform_7, window_bounds = array<i64: 1, 128>}, {pipeline_mode = #tpu.pipeline_mode<synchronous>, transform_indices = @transform_8, window_bounds = array<i64: 128, 512>}, {pipeline_mode = #tpu.pipeline_mode<synchronous>, transform_indices = @transform_9, window_bounds = array<i64: 1, 512>}, {pipeline_mode = #tpu.pipeline_mode<synchronous>, transform_indices = @transform_10, window_bounds = array<i64: 512, 128>}, {pipeline_mode = #tpu.pipeline_mode<synchronous>, transform_indices = @transform_11, window_bounds = array<i64: 1, 128>}, {transform_indices = @transform_12, window_bounds = array<i64: 1, 16, 128>}]} {
    %c0_i32 = arith.constant 0 : i32
    %0 = arith.cmpi eq, %arg1, %c0_i32 : i32
    %1 = arith.extui %0 : i1 to i32
    %c0_i32_0 = arith.constant 0 : i32
    %2 = arith.cmpi ne, %1, %c0_i32_0 : i32
    scf.if %2 {
      %c0_73 = arith.constant 0 : index
      %c0_74 = arith.constant 0 : index
      %157 = vector.load %arg3[%c0_73, %c0_74] : memref<1x128xf32, #tpu.memory_space<vmem>>, vector<1x128xf32>
      %158 = vector.shape_cast %157 : vector<1x128xf32> to vector<128xf32>
      %c0_75 = arith.constant 0 : index
      %c0_76 = arith.constant 0 : index
      %159 = vector.load %arg4[%c0_75, %c0_76] : memref<1x128xf32, #tpu.memory_space<vmem>>, vector<1x128xf32>
      %160 = vector.shape_cast %159 : vector<1x128xf32> to vector<128xf32>
      %c0_i32_77 = arith.constant 0 : i32
      %c32_i32 = arith.constant 32 : i32
      %161 = arith.muli %c0_i32_77, %c32_i32 : i32
      %162 = tpu.assume_multiple %161, 32 : i32
      %c0_78 = arith.constant 0 : index
      %163 = arith.index_cast %162 : i32 to index
      %c0_79 = arith.constant 0 : index
      %164 = vector.load %arg2[%c0_78, %163, %c0_79] : memref<1x32x128xf32, #tpu.memory_space<vmem>>, vector<1x32x128xf32>
      %165 = vector.shape_cast %164 : vector<1x32x128xf32> to vector<32x128xf32>
      %cst_80 = arith.constant dense<0.000000e+00> : vector<32xf32>
      %166 = vector.multi_reduction <add>, %165, %cst_80 [1] : vector<32x128xf32> to vector<32xf32>
      %167 = vector.shape_cast %166 : vector<32xf32> to vector<32x1xf32>
      %cst_81 = arith.constant 1.280000e+02 : f32
      %168 = vector.broadcast %cst_81 : f32 to vector<32x1xf32>
      %169 = arith.divf %167, %168 : vector<32x1xf32>
      %170 = vector.broadcast %169 : vector<32x1xf32> to vector<32x128xf32>
      %171 = arith.subf %165, %170 : vector<32x128xf32>
      %172 = arith.mulf %171, %171 : vector<32x128xf32>
      %cst_82 = arith.constant dense<0.000000e+00> : vector<32xf32>
      %173 = vector.multi_reduction <add>, %172, %cst_82 [1] : vector<32x128xf32> to vector<32xf32>
      %174 = vector.shape_cast %173 : vector<32xf32> to vector<32x1xf32>
      %cst_83 = arith.constant 1.280000e+02 : f32
      %175 = vector.broadcast %cst_83 : f32 to vector<32x1xf32>
      %176 = arith.divf %174, %175 : vector<32x1xf32>
      %177 = vector.broadcast %169 : vector<32x1xf32> to vector<32x128xf32>
      %178 = arith.subf %165, %177 : vector<32x128xf32>
      %cst_84 = arith.constant 9.99999974E-6 : f32
      %179 = vector.broadcast %cst_84 : f32 to vector<32x1xf32>
      %180 = arith.addf %176, %179 : vector<32x1xf32>
      %181 = math.rsqrt %180 : vector<32x1xf32>
      %182 = vector.broadcast %181 : vector<32x1xf32> to vector<32x128xf32>
      %183 = arith.mulf %178, %182 : vector<32x128xf32>
      %184 = vector.shape_cast %158 : vector<128xf32> to vector<1x128xf32>
      %185 = vector.broadcast %184 : vector<1x128xf32> to vector<32x128xf32>
      %186 = arith.mulf %183, %185 : vector<32x128xf32>
      %187 = vector.shape_cast %160 : vector<128xf32> to vector<1x128xf32>
      %188 = vector.broadcast %187 : vector<1x128xf32> to vector<32x128xf32>
      %189 = arith.addf %186, %188 : vector<32x128xf32>
      %190 = arith.truncf %189 : vector<32x128xf32> to vector<32x128xbf16>
      %c0_85 = arith.constant 0 : index
      %c0_86 = arith.constant 0 : index
      %191 = vector.load %arg5[%c0_85, %c0_86] : memref<128x384xbf16, #tpu.memory_space<vmem>>, vector<128x384xbf16>
      %cst_87 = arith.constant dense<0.000000e+00> : vector<32x384xf32>
      %192 = tpu.matmul %190, %191, %cst_87 {dimension_numbers = #tpu.dot_dimension_numbers<[1], [0], [0], [1], [0, 0, 1, 1], [], []>} : vector<32x128xbf16>, vector<128x384xbf16>, vector<32x384xf32> -> vector<32x384xf32>
      %193 = vector.extract_strided_slice %192 {offsets = [0, 0], sizes = [32, 128], strides = [1, 1]} : vector<32x384xf32> to vector<32x128xf32>
      %194 = arith.truncf %193 : vector<32x128xf32> to vector<32x128xbf16>
      %195 = arith.index_cast %162 : i32 to index
      %c0_88 = arith.constant 0 : index
      %196 = vector.load %arg15[%195, %c0_88] : memref<32x128xbf16, #tpu.memory_space<vmem>>, vector<32x128xbf16>
      tpu.vector_store %arg15[%195, %c0_88], %194 {strides = array<i32>} : memref<32x128xbf16, #tpu.memory_space<vmem>>, vector<32x128xbf16>,
      %197 = vector.extract_strided_slice %192 {offsets = [0, 128], sizes = [32, 128], strides = [1, 1]} : vector<32x384xf32> to vector<32x128xf32>
      %198 = arith.truncf %197 : vector<32x128xf32> to vector<32x128xbf16>
      %199 = arith.index_cast %162 : i32 to index
      %c0_89 = arith.constant 0 : index
      %200 = vector.load %arg16[%199, %c0_89] : memref<32x128xbf16, #tpu.memory_space<vmem>>, vector<32x128xbf16>
      tpu.vector_store %arg16[%199, %c0_89], %198 {strides = array<i32>} : memref<32x128xbf16, #tpu.memory_space<vmem>>, vector<32x128xbf16>,
      %201 = vector.extract_strided_slice %192 {offsets = [0, 256], sizes = [32, 128], strides = [1, 1]} : vector<32x384xf32> to vector<32x128xf32>
      %202 = arith.truncf %201 : vector<32x128xf32> to vector<32x128xbf16>
      %203 = arith.index_cast %162 : i32 to index
      %c0_90 = arith.constant 0 : index
      %204 = vector.load %arg17[%203, %c0_90] : memref<32x128xbf16, #tpu.memory_space<vmem>>, vector<32x128xbf16>
      tpu.vector_store %arg17[%203, %c0_90], %202 {strides = array<i32>} : memref<32x128xbf16, #tpu.memory_space<vmem>>, vector<32x128xbf16>,
      %c1_i32 = arith.constant 1 : i32
    } else {
    }
    %c16_i32 = arith.constant 16 : i32
    %3 = arith.muli %arg1, %c16_i32 : i32
    %4 = tpu.assume_multiple %3, 16 : i32
    %c0 = arith.constant 0 : index
    %5 = arith.index_cast %4 : i32 to index
    %c0_1 = arith.constant 0 : index
    %6 = vector.load %arg2[%c0, %5, %c0_1] : memref<1x32x128xf32, #tpu.memory_space<vmem>>, vector<1x16x128xf32>
    %7 = vector.shape_cast %6 : vector<1x16x128xf32> to vector<16x128xf32>
    %8 = arith.index_cast %4 : i32 to index
    %c0_2 = arith.constant 0 : index
    %9 = vector.load %arg15[%8, %c0_2] : memref<32x128xbf16, #tpu.memory_space<vmem>>, vector<16x128xbf16>
    %c0_3 = arith.constant 0 : index
    %c0_4 = arith.constant 0 : index
    %10 = vector.load %arg16[%c0_3, %c0_4] : memref<32x128xbf16, #tpu.memory_space<vmem>>, vector<32x128xbf16>
    %c0_5 = arith.constant 0 : index
    %c0_6 = arith.constant 0 : index
    %11 = vector.load %arg17[%c0_5, %c0_6] : memref<32x128xbf16, #tpu.memory_space<vmem>>, vector<32x128xbf16>
    %12 = vector.extract_strided_slice %9 {offsets = [0, 0], sizes = [16, 32], strides = [1, 1]} : vector<16x128xbf16> to vector<16x32xbf16>
    %13 = vector.extract_strided_slice %10 {offsets = [0, 0], sizes = [32, 32], strides = [1, 1]} : vector<32x128xbf16> to vector<32x32xbf16>
    %cst = arith.constant dense<0.000000e+00> : vector<16x32xf32>
    %14 = tpu.matmul %12, %13, %cst {dimension_numbers = #tpu.dot_dimension_numbers<[1], [1], [0], [0], [0, 0, 1, 0], [], []>} : vector<16x32xbf16>, vector<32x32xbf16>, vector<16x32xf32> -> vector<16x32xf32>
    %cst_7 = arith.constant dense<0xFF800000> : vector<16xf32>
    %15 = vector.multi_reduction <maximumf>, %14, %cst_7 [1] : vector<16x32xf32> to vector<16xf32>
    %16 = vector.shape_cast %15 : vector<16xf32> to vector<16x1xf32>
    %17 = vector.broadcast %16 : vector<16x1xf32> to vector<16x32xf32>
    %18 = arith.subf %14, %17 : vector<16x32xf32>
    %19 = math.exp %18 : vector<16x32xf32>
    %cst_8 = arith.constant dense<0.000000e+00> : vector<16xf32>
    %20 = vector.multi_reduction <add>, %19, %cst_8 [1] : vector<16x32xf32> to vector<16xf32>
    %21 = vector.shape_cast %20 : vector<16xf32> to vector<16x1xf32>
    %22 = arith.truncf %19 : vector<16x32xf32> to vector<16x32xbf16>
    %23 = vector.extract_strided_slice %11 {offsets = [0, 0], sizes = [32, 32], strides = [1, 1]} : vector<32x128xbf16> to vector<32x32xbf16>
    %cst_9 = arith.constant dense<0.000000e+00> : vector<16x32xf32>
    %24 = tpu.matmul %22, %23, %cst_9 {dimension_numbers = #tpu.dot_dimension_numbers<[1], [0], [0], [1], [0, 0, 1, 1], [], []>} : vector<16x32xbf16>, vector<32x32xbf16>, vector<16x32xf32> -> vector<16x32xf32>
    %25 = tpu.reciprocal %21 {approx = true} : vector<16x1xf32> -> vector<16x1xf32>
    %26 = vector.broadcast %25 : vector<16x1xf32> to vector<16x32xf32>
    %27 = arith.mulf %24, %26 : vector<16x32xf32>
    %c0_10 = arith.constant 0 : index
    %c0_11 = arith.constant 0 : index
    %28 = vector.load %arg18[%c0_10, %c0_11] : memref<16x128xf32, #tpu.memory_space<vmem>>, vector<16x32xf32>
    tpu.vector_store %arg18[%c0_10, %c0_11], %27 {strides = array<i32>} : memref<16x128xf32, #tpu.memory_space<vmem>>, vector<16x32xf32>,
    %29 = vector.extract_strided_slice %9 {offsets = [0, 32], sizes = [16, 32], strides = [1, 1]} : vector<16x128xbf16> to vector<16x32xbf16>
    %30 = vector.extract_strided_slice %10 {offsets = [0, 32], sizes = [32, 32], strides = [1, 1]} : vector<32x128xbf16> to vector<32x32xbf16>
    %cst_12 = arith.constant dense<0.000000e+00> : vector<16x32xf32>
    %31 = tpu.matmul %29, %30, %cst_12 {dimension_numbers = #tpu.dot_dimension_numbers<[1], [1], [0], [0], [0, 0, 1, 0], [], []>} : vector<16x32xbf16>, vector<32x32xbf16>, vector<16x32xf32> -> vector<16x32xf32>
    %cst_13 = arith.constant dense<0xFF800000> : vector<16xf32>
    %32 = vector.multi_reduction <maximumf>, %31, %cst_13 [1] : vector<16x32xf32> to vector<16xf32>
    %33 = vector.shape_cast %32 : vector<16xf32> to vector<16x1xf32>
    %34 = vector.broadcast %33 : vector<16x1xf32> to vector<16x32xf32>
    %35 = arith.subf %31, %34 : vector<16x32xf32>
    %36 = math.exp %35 : vector<16x32xf32>
    %cst_14 = arith.constant dense<0.000000e+00> : vector<16xf32>
    %37 = vector.multi_reduction <add>, %36, %cst_14 [1] : vector<16x32xf32> to vector<16xf32>
    %38 = vector.shape_cast %37 : vector<16xf32> to vector<16x1xf32>
    %39 = arith.truncf %36 : vector<16x32xf32> to vector<16x32xbf16>
    %40 = vector.extract_strided_slice %11 {offsets = [0, 32], sizes = [32, 32], strides = [1, 1]} : vector<32x128xbf16> to vector<32x32xbf16>
    %cst_15 = arith.constant dense<0.000000e+00> : vector<16x32xf32>
    %41 = tpu.matmul %39, %40, %cst_15 {dimension_numbers = #tpu.dot_dimension_numbers<[1], [0], [0], [1], [0, 0, 1, 1], [], []>} : vector<16x32xbf16>, vector<32x32xbf16>, vector<16x32xf32> -> vector<16x32xf32>
    %42 = tpu.reciprocal %38 {approx = true} : vector<16x1xf32> -> vector<16x1xf32>
    %43 = vector.broadcast %42 : vector<16x1xf32> to vector<16x32xf32>
    %44 = arith.mulf %41, %43 : vector<16x32xf32>
    %c0_16 = arith.constant 0 : index
    %c32 = arith.constant 32 : index
    %45 = vector.load %arg18[%c0_16, %c32] : memref<16x128xf32, #tpu.memory_space<vmem>>, vector<16x32xf32>
    tpu.vector_store %arg18[%c0_16, %c32], %44 {strides = array<i32>} : memref<16x128xf32, #tpu.memory_space<vmem>>, vector<16x32xf32>,
    %46 = vector.extract_strided_slice %9 {offsets = [0, 64], sizes = [16, 32], strides = [1, 1]} : vector<16x128xbf16> to vector<16x32xbf16>
    %47 = vector.extract_strided_slice %10 {offsets = [0, 64], sizes = [32, 32], strides = [1, 1]} : vector<32x128xbf16> to vector<32x32xbf16>
    %cst_17 = arith.constant dense<0.000000e+00> : vector<16x32xf32>
    %48 = tpu.matmul %46, %47, %cst_17 {dimension_numbers = #tpu.dot_dimension_numbers<[1], [1], [0], [0], [0, 0, 1, 0], [], []>} : vector<16x32xbf16>, vector<32x32xbf16>, vector<16x32xf32> -> vector<16x32xf32>
    %cst_18 = arith.constant dense<0xFF800000> : vector<16xf32>
    %49 = vector.multi_reduction <maximumf>, %48, %cst_18 [1] : vector<16x32xf32> to vector<16xf32>
    %50 = vector.shape_cast %49 : vector<16xf32> to vector<16x1xf32>
    %51 = vector.broadcast %50 : vector<16x1xf32> to vector<16x32xf32>
    %52 = arith.subf %48, %51 : vector<16x32xf32>
    %53 = math.exp %52 : vector<16x32xf32>
    %cst_19 = arith.constant dense<0.000000e+00> : vector<16xf32>
    %54 = vector.multi_reduction <add>, %53, %cst_19 [1] : vector<16x32xf32> to vector<16xf32>
    %55 = vector.shape_cast %54 : vector<16xf32> to vector<16x1xf32>
    %56 = arith.truncf %53 : vector<16x32xf32> to vector<16x32xbf16>
    %57 = vector.extract_strided_slice %11 {offsets = [0, 64], sizes = [32, 32], strides = [1, 1]} : vector<32x128xbf16> to vector<32x32xbf16>
    %cst_20 = arith.constant dense<0.000000e+00> : vector<16x32xf32>
    %58 = tpu.matmul %56, %57, %cst_20 {dimension_numbers = #tpu.dot_dimension_numbers<[1], [0], [0], [1], [0, 0, 1, 1], [], []>} : vector<16x32xbf16>, vector<32x32xbf16>, vector<16x32xf32> -> vector<16x32xf32>
    %59 = tpu.reciprocal %55 {approx = true} : vector<16x1xf32> -> vector<16x1xf32>
    %60 = vector.broadcast %59 : vector<16x1xf32> to vector<16x32xf32>
    %61 = arith.mulf %58, %60 : vector<16x32xf32>
    %c0_21 = arith.constant 0 : index
    %c64 = arith.constant 64 : index
    %62 = vector.load %arg18[%c0_21, %c64] : memref<16x128xf32, #tpu.memory_space<vmem>>, vector<16x32xf32>
    tpu.vector_store %arg18[%c0_21, %c64], %61 {strides = array<i32>} : memref<16x128xf32, #tpu.memory_space<vmem>>, vector<16x32xf32>,
    %63 = vector.extract_strided_slice %9 {offsets = [0, 96], sizes = [16, 32], strides = [1, 1]} : vector<16x128xbf16> to vector<16x32xbf16>
    %64 = vector.extract_strided_slice %10 {offsets = [0, 96], sizes = [32, 32], strides = [1, 1]} : vector<32x128xbf16> to vector<32x32xbf16>
    %cst_22 = arith.constant dense<0.000000e+00> : vector<16x32xf32>
    %65 = tpu.matmul %63, %64, %cst_22 {dimension_numbers = #tpu.dot_dimension_numbers<[1], [1], [0], [0], [0, 0, 1, 0], [], []>} : vector<16x32xbf16>, vector<32x32xbf16>, vector<16x32xf32> -> vector<16x32xf32>
    %cst_23 = arith.constant dense<0xFF800000> : vector<16xf32>
    %66 = vector.multi_reduction <maximumf>, %65, %cst_23 [1] : vector<16x32xf32> to vector<16xf32>
    %67 = vector.shape_cast %66 : vector<16xf32> to vector<16x1xf32>
    %68 = vector.broadcast %67 : vector<16x1xf32> to vector<16x32xf32>
    %69 = arith.subf %65, %68 : vector<16x32xf32>
    %70 = math.exp %69 : vector<16x32xf32>
    %cst_24 = arith.constant dense<0.000000e+00> : vector<16xf32>
    %71 = vector.multi_reduction <add>, %70, %cst_24 [1] : vector<16x32xf32> to vector<16xf32>
    %72 = vector.shape_cast %71 : vector<16xf32> to vector<16x1xf32>
    %73 = arith.truncf %70 : vector<16x32xf32> to vector<16x32xbf16>
    %74 = vector.extract_strided_slice %11 {offsets = [0, 96], sizes = [32, 32], strides = [1, 1]} : vector<32x128xbf16> to vector<32x32xbf16>
    %cst_25 = arith.constant dense<0.000000e+00> : vector<16x32xf32>
    %75 = tpu.matmul %73, %74, %cst_25 {dimension_numbers = #tpu.dot_dimension_numbers<[1], [0], [0], [1], [0, 0, 1, 1], [], []>} : vector<16x32xbf16>, vector<32x32xbf16>, vector<16x32xf32> -> vector<16x32xf32>
    %76 = tpu.reciprocal %72 {approx = true} : vector<16x1xf32> -> vector<16x1xf32>
    %77 = vector.broadcast %76 : vector<16x1xf32> to vector<16x32xf32>
    %78 = arith.mulf %75, %77 : vector<16x32xf32>
    %c0_26 = arith.constant 0 : index
    %c96 = arith.constant 96 : index
    %79 = vector.load %arg18[%c0_26, %c96] : memref<16x128xf32, #tpu.memory_space<vmem>>, vector<16x32xf32>
    tpu.vector_store %arg18[%c0_26, %c96], %78 {strides = array<i32>} : memref<16x128xf32, #tpu.memory_space<vmem>>, vector<16x32xf32>,
    %c0_27 = arith.constant 0 : index
    %c0_28 = arith.constant 0 : index
    %80 = vector.load %arg18[%c0_27, %c0_28] : memref<16x128xf32, #tpu.memory_space<vmem>>, vector<16x128xf32>
    %81 = arith.truncf %80 : vector<16x128xf32> to vector<16x128xbf16>
    %c0_29 = arith.constant 0 : index
    %c0_30 = arith.constant 0 : index
    %82 = vector.load %arg6[%c0_29, %c0_30] : memref<128x128xbf16, #tpu.memory_space<vmem>>, vector<128x128xbf16>
    %cst_31 = arith.constant dense<0.000000e+00> : vector<16x128xf32>
    %83 = tpu.matmul %81, %82, %cst_31 {dimension_numbers = #tpu.dot_dimension_numbers<[1], [0], [0], [1], [0, 0, 1, 1], [], []>} : vector<16x128xbf16>, vector<128x128xbf16>, vector<16x128xf32> -> vector<16x128xf32>
    %c0_32 = arith.constant 0 : index
    %c0_33 = arith.constant 0 : index
    %84 = vector.load %arg7[%c0_32, %c0_33] : memref<1x128xf32, #tpu.memory_space<vmem>>, vector<1x128xf32>
    %85 = vector.shape_cast %84 : vector<1x128xf32> to vector<128xf32>
    %86 = vector.shape_cast %85 : vector<128xf32> to vector<1x128xf32>
    %87 = vector.broadcast %86 : vector<1x128xf32> to vector<16x128xf32>
    %88 = arith.addf %83, %87 : vector<16x128xf32>
    %89 = arith.addf %7, %88 : vector<16x128xf32>
    %cst_34 = arith.constant dense<0.000000e+00> : vector<16xf32>
    %90 = vector.multi_reduction <add>, %89, %cst_34 [1] : vector<16x128xf32> to vector<16xf32>
    %91 = vector.shape_cast %90 : vector<16xf32> to vector<16x1xf32>
    %cst_35 = arith.constant 1.280000e+02 : f32
    %92 = vector.broadcast %cst_35 : f32 to vector<16x1xf32>
    %93 = arith.divf %91, %92 : vector<16x1xf32>
    %94 = vector.broadcast %93 : vector<16x1xf32> to vector<16x128xf32>
    %95 = arith.subf %89, %94 : vector<16x128xf32>
    %96 = arith.mulf %95, %95 : vector<16x128xf32>
    %cst_36 = arith.constant dense<0.000000e+00> : vector<16xf32>
    %97 = vector.multi_reduction <add>, %96, %cst_36 [1] : vector<16x128xf32> to vector<16xf32>
    %98 = vector.shape_cast %97 : vector<16xf32> to vector<16x1xf32>
    %cst_37 = arith.constant 1.280000e+02 : f32
    %99 = vector.broadcast %cst_37 : f32 to vector<16x1xf32>
    %100 = arith.divf %98, %99 : vector<16x1xf32>
    %101 = vector.broadcast %93 : vector<16x1xf32> to vector<16x128xf32>
    %102 = arith.subf %89, %101 : vector<16x128xf32>
    %cst_38 = arith.constant 9.99999974E-6 : f32
    %103 = vector.broadcast %cst_38 : f32 to vector<16x1xf32>
    %104 = arith.addf %100, %103 : vector<16x1xf32>
    %105 = math.rsqrt %104 : vector<16x1xf32>
    %106 = vector.broadcast %105 : vector<16x1xf32> to vector<16x128xf32>
    %107 = arith.mulf %102, %106 : vector<16x128xf32>
    %c0_39 = arith.constant 0 : index
    %c0_40 = arith.constant 0 : index
    %108 = vector.load %arg8[%c0_39, %c0_40] : memref<1x128xf32, #tpu.memory_space<vmem>>, vector<1x128xf32>
    %109 = vector.shape_cast %108 : vector<1x128xf32> to vector<128xf32>
    %110 = vector.shape_cast %109 : vector<128xf32> to vector<1x128xf32>
    %111 = vector.broadcast %110 : vector<1x128xf32> to vector<16x128xf32>
    %112 = arith.mulf %107, %111 : vector<16x128xf32>
    %c0_41 = arith.constant 0 : index
    %c0_42 = arith.constant 0 : index
    %113 = vector.load %arg9[%c0_41, %c0_42] : memref<1x128xf32, #tpu.memory_space<vmem>>, vector<1x128xf32>
    %114 = vector.shape_cast %113 : vector<1x128xf32> to vector<128xf32>
    %115 = vector.shape_cast %114 : vector<128xf32> to vector<1x128xf32>
    %116 = vector.broadcast %115 : vector<1x128xf32> to vector<16x128xf32>
    %117 = arith.addf %112, %116 : vector<16x128xf32>
    %118 = arith.truncf %117 : vector<16x128xf32> to vector<16x128xbf16>
    %c0_43 = arith.constant 0 : index
    %c0_44 = arith.constant 0 : index
    %119 = vector.load %arg10[%c0_43, %c0_44] : memref<128x512xbf16, #tpu.memory_space<vmem>>, vector<128x256xbf16>
    %cst_45 = arith.constant dense<0.000000e+00> : vector<16x256xf32>
    %120 = tpu.matmul %118, %119, %cst_45 {dimension_numbers = #tpu.dot_dimension_numbers<[1], [0], [0], [1], [0, 0, 1, 1], [], []>} : vector<16x128xbf16>, vector<128x256xbf16>, vector<16x256xf32> -> vector<16x256xf32>
    %c0_46 = arith.constant 0 : index
    %c0_47 = arith.constant 0 : index
    %121 = vector.load %arg11[%c0_46, %c0_47] : memref<1x512xf32, #tpu.memory_space<vmem>>, vector<1x256xf32>
    %122 = vector.shape_cast %121 : vector<1x256xf32> to vector<256xf32>
    %123 = vector.shape_cast %122 : vector<256xf32> to vector<1x256xf32>
    %124 = vector.broadcast %123 : vector<1x256xf32> to vector<16x256xf32>
    %125 = arith.addf %120, %124 : vector<16x256xf32>
    %cst_48 = arith.constant 0.000000e+00 : f32
    %126 = vector.broadcast %cst_48 : f32 to vector<16x256xf32>
    %127 = arith.maximumf %125, %126 : vector<16x256xf32>
    %128 = arith.truncf %127 : vector<16x256xf32> to vector<16x256xbf16>
    %c0_49 = arith.constant 0 : index
    %c0_50 = arith.constant 0 : index
    %129 = vector.load %arg12[%c0_49, %c0_50] : memref<512x128xbf16, #tpu.memory_space<vmem>>, vector<256x128xbf16>
    %cst_51 = arith.constant dense<0.000000e+00> : vector<16x128xf32>
    %130 = tpu.matmul %128, %129, %cst_51 {dimension_numbers = #tpu.dot_dimension_numbers<[1], [0], [0], [1], [0, 0, 1, 1], [], []>} : vector<16x256xbf16>, vector<256x128xbf16>, vector<16x128xf32> -> vector<16x128xf32>
    %c0_52 = arith.constant 0 : index
    %c0_53 = arith.constant 0 : index
    %131 = vector.load %arg18[%c0_52, %c0_53] : memref<16x128xf32, #tpu.memory_space<vmem>>, vector<16x128xf32>
    tpu.vector_store %arg18[%c0_52, %c0_53], %130 {strides = array<i32>} : memref<16x128xf32, #tpu.memory_space<vmem>>, vector<16x128xf32>,
    %c0_54 = arith.constant 0 : index
    %c256 = arith.constant 256 : index
    %132 = vector.load %arg10[%c0_54, %c256] : memref<128x512xbf16, #tpu.memory_space<vmem>>, vector<128x256xbf16>
    %cst_55 = arith.constant dense<0.000000e+00> : vector<16x256xf32>
    %133 = tpu.matmul %118, %132, %cst_55 {dimension_numbers = #tpu.dot_dimension_numbers<[1], [0], [0], [1], [0, 0, 1, 1], [], []>} : vector<16x128xbf16>, vector<128x256xbf16>, vector<16x256xf32> -> vector<16x256xf32>
    %c0_56 = arith.constant 0 : index
    %c256_57 = arith.constant 256 : index
    %134 = vector.load %arg11[%c0_56, %c256_57] : memref<1x512xf32, #tpu.memory_space<vmem>>, vector<1x256xf32>
    %135 = vector.shape_cast %134 : vector<1x256xf32> to vector<256xf32>
    %136 = vector.shape_cast %135 : vector<256xf32> to vector<1x256xf32>
    %137 = vector.broadcast %136 : vector<1x256xf32> to vector<16x256xf32>
    %138 = arith.addf %133, %137 : vector<16x256xf32>
    %cst_58 = arith.constant 0.000000e+00 : f32
    %139 = vector.broadcast %cst_58 : f32 to vector<16x256xf32>
    %140 = arith.maximumf %138, %139 : vector<16x256xf32>
    %141 = arith.truncf %140 : vector<16x256xf32> to vector<16x256xbf16>
    %c256_59 = arith.constant 256 : index
    %c0_60 = arith.constant 0 : index
    %142 = vector.load %arg12[%c256_59, %c0_60] : memref<512x128xbf16, #tpu.memory_space<vmem>>, vector<256x128xbf16>
    %cst_61 = arith.constant dense<0.000000e+00> : vector<16x128xf32>
    %143 = tpu.matmul %141, %142, %cst_61 {dimension_numbers = #tpu.dot_dimension_numbers<[1], [0], [0], [1], [0, 0, 1, 1], [], []>} : vector<16x256xbf16>, vector<256x128xbf16>, vector<16x128xf32> -> vector<16x128xf32>
    %c0_62 = arith.constant 0 : index
    %c0_63 = arith.constant 0 : index
    %144 = vector.load %arg18[%c0_62, %c0_63] : memref<16x128xf32, #tpu.memory_space<vmem>>, vector<16x128xf32>
    %145 = arith.addf %144, %143 : vector<16x128xf32>
    %c0_64 = arith.constant 0 : index
    %c0_65 = arith.constant 0 : index
    %146 = vector.load %arg18[%c0_64, %c0_65] : memref<16x128xf32, #tpu.memory_space<vmem>>, vector<16x128xf32>
    tpu.vector_store %arg18[%c0_64, %c0_65], %145 {strides = array<i32>} : memref<16x128xf32, #tpu.memory_space<vmem>>, vector<16x128xf32>,
    %c0_66 = arith.constant 0 : index
    %c0_67 = arith.constant 0 : index
    %147 = vector.load %arg18[%c0_66, %c0_67] : memref<16x128xf32, #tpu.memory_space<vmem>>, vector<16x128xf32>
    %148 = arith.addf %89, %147 : vector<16x128xf32>
    %c0_68 = arith.constant 0 : index
    %c0_69 = arith.constant 0 : index
    %149 = vector.load %arg13[%c0_68, %c0_69] : memref<1x128xf32, #tpu.memory_space<vmem>>, vector<1x128xf32>
    %150 = vector.shape_cast %149 : vector<1x128xf32> to vector<128xf32>
    %151 = vector.shape_cast %150 : vector<128xf32> to vector<1x128xf32>
    %152 = vector.broadcast %151 : vector<1x128xf32> to vector<16x128xf32>
    %153 = arith.addf %148, %152 : vector<16x128xf32>
    %c0_70 = arith.constant 0 : index
    %c0_71 = arith.constant 0 : index
    %c0_72 = arith.constant 0 : index
    %154 = vector.load %arg14[%c0_70, %c0_71, %c0_72] : memref<1x16x128xf32, #tpu.memory_space<vmem>>, vector<1x16x128xf32>
    %155 = vector.shape_cast %154 : vector<1x16x128xf32> to vector<16x128xf32>
    %156 = vector.shape_cast %153 : vector<16x128xf32> to vector<1x16x128xf32>
    tpu.vector_store %arg14[%c0_70, %c0_71, %c0_72], %156 {strides = array<i32>} : memref<1x16x128xf32, #tpu.memory_space<vmem>>, vector<1x16x128xf32>,
    return
  }
  func.func @transform_0(%arg0: i32, %arg1: i32) -> (i32, i32, i32) {
    %c0_i32 = arith.constant 0 : i32
    %c0_i32_0 = arith.constant 0 : i32
    %c0_i32_1 = arith.constant 0 : i32
    return %arg0, %c0_i32, %c0_i32_0 : i32, i32, i32
  }
  func.func @transform_1(%arg0: i32, %arg1: i32) -> (i32, i32) {
    %c0_i32 = arith.constant 0 : i32
    %c0_i32_0 = arith.constant 0 : i32
    %c0_i32_1 = arith.constant 0 : i32
    return %c0_i32, %c0_i32_0 : i32, i32
  }
  func.func @transform_2(%arg0: i32, %arg1: i32) -> (i32, i32) {
    %c0_i32 = arith.constant 0 : i32
    %c0_i32_0 = arith.constant 0 : i32
    %c0_i32_1 = arith.constant 0 : i32
    return %c0_i32, %c0_i32_0 : i32, i32
  }
  func.func @transform_3(%arg0: i32, %arg1: i32) -> (i32, i32) {
    %c0_i32 = arith.constant 0 : i32
    %c0_i32_0 = arith.constant 0 : i32
    %c0_i32_1 = arith.constant 0 : i32
    return %c0_i32, %c0_i32_0 : i32, i32
  }
  func.func @transform_4(%arg0: i32, %arg1: i32) -> (i32, i32) {
    %c0_i32 = arith.constant 0 : i32
    %c0_i32_0 = arith.constant 0 : i32
    %c0_i32_1 = arith.constant 0 : i32
    return %c0_i32, %c0_i32_0 : i32, i32
  }
  func.func @transform_5(%arg0: i32, %arg1: i32) -> (i32, i32) {
    %c0_i32 = arith.constant 0 : i32
    %c0_i32_0 = arith.constant 0 : i32
    %c0_i32_1 = arith.constant 0 : i32
    return %c0_i32, %c0_i32_0 : i32, i32
  }
  func.func @transform_6(%arg0: i32, %arg1: i32) -> (i32, i32) {
    %c0_i32 = arith.constant 0 : i32
    %c0_i32_0 = arith.constant 0 : i32
    %c0_i32_1 = arith.constant 0 : i32
    return %c0_i32, %c0_i32_0 : i32, i32
  }
  func.func @transform_7(%arg0: i32, %arg1: i32) -> (i32, i32) {
    %c0_i32 = arith.constant 0 : i32
    %c0_i32_0 = arith.constant 0 : i32
    %c0_i32_1 = arith.constant 0 : i32
    return %c0_i32, %c0_i32_0 : i32, i32
  }
  func.func @transform_8(%arg0: i32, %arg1: i32) -> (i32, i32) {
    %c0_i32 = arith.constant 0 : i32
    %c0_i32_0 = arith.constant 0 : i32
    %c0_i32_1 = arith.constant 0 : i32
    return %c0_i32, %c0_i32_0 : i32, i32
  }
  func.func @transform_9(%arg0: i32, %arg1: i32) -> (i32, i32) {
    %c0_i32 = arith.constant 0 : i32
    %c0_i32_0 = arith.constant 0 : i32
    %c0_i32_1 = arith.constant 0 : i32
    return %c0_i32, %c0_i32_0 : i32, i32
  }
  func.func @transform_10(%arg0: i32, %arg1: i32) -> (i32, i32) {
    %c0_i32 = arith.constant 0 : i32
    %c0_i32_0 = arith.constant 0 : i32
    %c0_i32_1 = arith.constant 0 : i32
    return %c0_i32, %c0_i32_0 : i32, i32
  }
  func.func @transform_11(%arg0: i32, %arg1: i32) -> (i32, i32) {
    %c0_i32 = arith.constant 0 : i32
    %c0_i32_0 = arith.constant 0 : i32
    %c0_i32_1 = arith.constant 0 : i32
    return %c0_i32, %c0_i32_0 : i32, i32
  }
  func.func @transform_12(%arg0: i32, %arg1: i32) -> (i32, i32, i32) {
    %c0_i32 = arith.constant 0 : i32
    %c0_i32_0 = arith.constant 0 : i32
    return %arg0, %arg1, %c0_i32 : i32, i32, i32
  }
}

</mosaic_0001>

<bundles_post_ra>
// kernel: tpu_custom_call.1
= control target key start
LH: loop header
LB: loop body
LE: loop exit
PB: predicated region body
PF: predicated region fallthrough
CT: control target
= control target key end

     0   :  { %s3849_s0 = inlined_call_operand.hbm [shape: f32[2,32,128], index: 0, kind: input, shape index: {}]   ;;  %s3850_s1 = inlined_call_operand.hbm [shape: f32[1,128], index: 1, kind: input, shape index: {}]   ;;  %s3851_s2 = inlined_call_operand.vmem [shape: f32[1,128], index: 2, kind: input, shape index: {}]   ;;  %s3852_s3 = inlined_call_operand.hbm [shape: bf16[128,384], index: 3, kind: input, shape index: {}]   ;;  %s3853_s4 = inlined_call_operand.hbm [shape: bf16[128,128], index: 4, kind: input, shape index: {}]   ;;  %s3854_s5 = inlined_call_operand.vmem [shape: f32[1,128], index: 5, kind: input, shape index: {}]   ;;  %s3855_s6 = inlined_call_operand.vmem [shape: f32[1,128], index: 6, kind: input, shape index: {}]   ;;  %s3856_s7 = inlined_call_operand.hbm [shape: f32[1,128], index: 7, kind: input, shape index: {}]   ;;  %s3857_s8 = inlined_call_operand.hbm [shape: bf16[128,512], index: 8, kind: input, shape index: {}]   ;;  %s3858_s9 = inlined_call_operand.vmem [shape: f32[1,512], index: 9, kind: input, shape index: {}]   ;;  %s3859_s10 = inlined_call_operand.hbm [shape: bf16[512,128], index: 10, kind: input, shape index: {}]   ;;  %s3860_s11 = inlined_call_operand.vmem [shape: f32[1,128], index: 11, kind: input, shape index: {}]   ;;  %s3861_s12 = inlined_call_operand.hbm [shape: f32[2,32,128], index: 12, kind: output, shape index: {}]  }
   0x1   :  { %3869 = sst [smem:[#allocation28_spill]] %s3850_s1 }
   0x2   :  { %3870 = sst [smem:[#allocation29_spill]] %s3851_s2 }
   0x3   :  { %3871 = sst [smem:[#allocation30_spill]] %s3852_s3 }
   0x4   :  { %3872 = sst [smem:[#allocation31_spill]] %s3853_s4 }
   0x5   :  { %3873 = sst [smem:[#allocation32_spill]] %s3854_s5 }
   0x6   :  { %3874 = sst [smem:[#allocation33_spill]] %s3855_s6 }
   0x7   :  { %3875 = sst [smem:[#allocation34_spill]] %s3856_s7 }
   0x8   :  { %3876 = sst [smem:[#allocation35_spill]] %s3857_s8 }
   0x9   :  { %3877 = sst [smem:[#allocation36_spill]] %s3858_s9 }
   0xa   :  { %3878 = sst [smem:[#allocation37_spill]] %s3859_s10 }
   0xb   :  { %3879 = sst [smem:[#allocation38_spill]] %s3860_s11 }
   0xc   :  { %3880 = sst [smem:[#allocation39_spill]] %s3861_s12 }
   0xd   :  { %17 = vsyncpa [#allocation7], 0 }
   0xe   :  { %19 = vsyncpa [#allocation7 + $0x1], 0 }
   0xf   :  { %20 = vsyncpa [#allocation10], 0 }
  0x10   :  { %21 = vsyncpa [#allocation13], 0 }
  0x11   :  { %22 = vsyncpa [#allocation16], 0 }
  0x12   :  { %23 = vsyncpa [#allocation8], 0 }
  0x13   :  { %25 = vsyncpa [#allocation8 + $0x1], 0  ;;  %s3435_s21 = smov 0   ;;  %s3437_s22 = smov 0  }
  0x14   :  { %s3439_s23 = smov 0   ;;  %s3441_s24 = smov 0  }
  0x15   :  { %s3443_s25 = smov 0   ;;  %s3445_s26 = smov 0  }
  0x16   :  { %s3447_s27 = smov 0   ;;  %s3449_s28 = smov 0  }
  0x17   :  { %s3451_s29 = smov 0   ;;  %s3453_s30 = smov 0  }
  0x18   :  { %s3455_s13 = smov 0  }
  0x19 LB: > { %3881 = sst [smem:[#allocation24_spill]] %s3331_s27  ;;  %s2185_s14 = sadd.s32 4294967295, %s3347_s13   ;;  %s3347_s13 = sphi %s3455_s13, %s31_s13   ;;  %s3343_s30 = sphi %s3453_s30, %s3922_s30   ;;  %s3339_s29 = sphi %s3451_s29, %s3921_s29   ;;  %s3335_s28 = sphi %s3449_s28, %s3920_s28   ;;  %s3331_s27 = sphi %s3447_s27, %s3919_s27   ;;  %s3327_s26 = sphi %s3445_s26, %s3918_s26   ;;  %s3323_s25 = sphi %s3443_s25, %s3917_s25   ;;  %s3319_s24 = sphi %s3441_s24, %s3916_s24   ;;  %s3315_s23 = sphi %s3439_s23, %s3915_s23   ;;  %s3311_s22 = sphi %s3437_s22, %s3914_s22   ;;  %s3307_s21 = sphi %s3435_s21, %s3913_s21  }
  0x1a   : > { %3882 = sst [smem:[#allocation25_spill]] %s3335_s28  ;;  %p2187_p0 = scmp.ge.s32.totalorder %s3347_s13, 1 }
  0x1b   : > { %p3492_p1 = scmp.eq.s32.totalorder %s2185_s14, 0  ;;  %p3496_p2 = scmp.eq.s32.totalorder %s2185_s14, 3 }
  0x1c   : > { %p333_p3 = scmp.lt.s32.totalorder %s3347_s13, 5  ;;  %s3885_s1 = sld [smem:[#allocation28_spill]] }
  0x1d   : > { %s3349_s12 = smov [#allocation9]   ;;  %s3887_s4 = sld [smem:[#allocation31_spill]] }
  0x1e   : > { %p3504_p4 = pnand %p2187_p0, %p333_p3  ;;  %s347_s11 = sshll.u32 %s3349_s12, 4  ;;  %s348_s11 = int_to_ptr.vmem [resolvable:$true] %s347_s11 }
  0x1f   : > { %s3350_s17 = smov [#allocation12]   ;;  %s3889_s8 = sld [smem:[#allocation35_spill]] }
  0x20   : > { %p2799_p5 = pneg %p3504_p4  ;;  %s375_s18 = sshll.u32 %s3350_s17, 4  ;;  %s376_s18 = int_to_ptr.vmem [resolvable:$true] %s375_s18 }
  0x21   : > { %s3865_s28 = smov 64   ;;  %s3866_s14 = smov 4  }
  0x22   : > { %s345_s19 = sshll.u32 %s3885_s1, 4  ;;  %p3515_p6 = pnand %p2799_p5, %p3492_p1  ;;  %s346_s19 = int_to_ptr.hbm [resolvable:$true] %s345_s19 }
  0x23   : > { %s373_s9 = sshll.u32 %s3887_s4, 4  ;;  %s3353_s4 = smov [#allocation15]   ;;  %s374_s9 = int_to_ptr.hbm [resolvable:$true] %s373_s9 }
  0x24   : > { %2802 = dma.hbm_to_vmem [thread:$0]  (!%p3515_p6), %s346_s19, 16, %s348_s11, [#allocation10]  }
  0x25   : > { %s405_s5 = sshll.u32 %s3889_s8, 4  ;;  %s407_s2 = sshll.u32 %s3353_s4, 4  ;;  %s406_s5 = int_to_ptr.hbm [resolvable:$true] %s405_s5  ;;  %s408_s2 = int_to_ptr.vmem [resolvable:$true] %s407_s2 }
  0x26   : > { %2808 = dma.hbm_to_vmem [thread:$0]  (!%p3515_p6), %s374_s9, 1024, %s376_s18, [#allocation13], %s3865_s28, %s3865_s28, %s3866_s14  }
  0x27   : > { %s3354_s17 = smov 256   ;;  %s3355_s27 = smov 16  }
  0x28   : > { %2814 = dma.hbm_to_vmem [thread:$0]  (!%p3515_p6), %s406_s5, 4096, %s408_s2, [#allocation16], %s3354_s17, %s3354_s17, %s3355_s27  }
  0x29   : > { %s3890_s3 = sld [smem:[#allocation30_spill]]  ;;  %s3356_s12 = smov [#allocation11]  }
  0x2a   : > { %s361_s8 = sshll.u32 %s3356_s12, 4  ;;  %s3891_s7 = sld [smem:[#allocation34_spill]]  ;;  %s362_s8 = int_to_ptr.vmem [resolvable:$true] %s361_s8 }
  0x2b   : > { %s3357_s28 = smov 192   ;;  %s3358_s14 = smov 12  }
  0x2c   : > { %s3359_s2 = smov [#allocation14]   ;;  %s3892_s10 = sld [smem:[#allocation37_spill]] }
  0x2d   : > { %s396_s5 = sshll.u32 %s3359_s2, 4  ;;  %s3360_s19 = smov [#allocation17]   ;;  %s397_s5 = int_to_ptr.vmem [resolvable:$true] %s396_s5 }
  0x2e   : > { %s40_s12 = sadd.s32 1, %s3339_s29  ;;  %s43_s9 = sadd.s32 1, %s3343_s30 }
  0x2f   : > { %s359_s1 = sshll.u32 %s3890_s3, 4  ;;  %p41_p7 = scmp.ge.s32.totalorder %s40_s12, 2  ;;  %s360_s1 = int_to_ptr.hbm [resolvable:$true] %s359_s1 }
  0x30   : > { %s394_s4 = sshll.u32 %s3891_s7, 4  ;;  %s50_s18 = sadd.s32 1, %s3327_s26  ;;  %s395_s4 = int_to_ptr.hbm [resolvable:$true] %s394_s4 }
  0x31   : > { %2805 = dma.hbm_to_vmem [thread:$0]  (!%p3515_p6), %s360_s1, 3072, %s362_s8, [#allocation10], %s3357_s28, %s3357_s28, %s3358_s14  }
  0x32   : > { %s422_s11 = sshll.u32 %s3892_s10, 4  ;;  %s424_s8 = sshll.u32 %s3360_s19, 4  ;;  %s423_s11 = int_to_ptr.hbm [resolvable:$true] %s422_s11  ;;  %s425_s8 = int_to_ptr.vmem [resolvable:$true] %s424_s8 }
  0x33   : > { %2811 = dma.hbm_to_vmem [thread:$0]  (!%p3515_p6), %s395_s4, 16, %s397_s5, [#allocation13]  }
  0x34   : > { %s3893_s28 = smov 4   ;;  %s3894_s14 = smov 64  }
  0x35   : > { %2817 = dma.hbm_to_vmem [thread:$0]  (!%p3515_p6), %s423_s11, 4096, %s425_s8, [#allocation16], %s3894_s14, %s3894_s14, %s3893_s28  }
  0x36   : > { %s2186_s1 = sadd.s32 4294967294, %s3347_s13   ;;  %p57_p8 = scmp.ne.s32.totalorder %s3327_s26, %s3323_s25 }
  0x37   : > { %p58_p9 = scmp.eq.s32.totalorder %s3347_s13, 0  ;;  %s3924_s12 = smov (%p41_p7, %s40_s12), 0 }
  0x38   : > { %3895 = sst [smem:[#allocation26_spill]] %s3924_s12  ;;  %s3926_s9 = smov (!%p41_p7, %s43_s9), %s3343_s30 }
  0x39   : > { %p3559_p10 = por %p58_p9, %p57_p8  ;;  %p63_p11 = scmp.ne.s32.totalorder %s3323_s25, %s3319_s24 }
  0x3a   : > { %p45_p12 = scmp.ge.s32.totalorder %s3926_s9, 2  ;;  %s305_s4 = ssub.s32 %s3339_s29, %s3924_s12 }
  0x3b   : > { %p3569_p13 = por %p3492_p1, %p63_p11  ;;  %s309_s5 = sadd.s32 1, %s3315_s23 }
  0x3c   : > { %s3928_s9 = smov (%p45_p12, %s3926_s9), 0  ;;  %p319_p0 = scmp.ne.s32.totalorder %s3315_s23, %s3311_s22 }
  0x3d   : > { %3898 = sst [smem:[#allocation27_spill]] %s3928_s9  ;;  %p325_p3 = scmp.ne.s32.totalorder %s3311_s22, %s3307_s21 }
  0x3e   : > { %s47_s27 = ssub.s32 %s3343_s30, %s3928_s9  ;;  %p326_p5 = scmp.eq.s32.totalorder %s2186_s1, 3 }
  0x3f   : > { %p48_p6 = scmp.eq.s32.totalorder %s47_s27, 0  ;;  %s306_s24 = sor.u32 %s305_s4, %s47_s27 }
  0x40   : > { %p307_p7 = scmp.eq.s32.totalorder %s306_s24, 0  ;;  %p3584_p8 = por %p3496_p2, %p319_p0 }
  0x41   : > { %s3589_s11 = scalar_select %p48_p6, %s3327_s26, %s50_s18  }
  0x42   : > { %s3592_s19 = scalar_select %p307_p7, %s3315_s23, %s309_s5  }
  0x43   : > { %p3594_p9 = por %p326_p5, %p325_p3  ;;  %p2832_p11 = scmp.lt.s32.totalorder %s3347_s13, 4 }
  0x44   : > { %s441_s28 = sand.u32 1, %s3327_s26   ;;  %s2628_s14 = sshll.u32 %s3343_s30, 5 }
  0x45   : > { %s2195_s1 = sshll.u32 %s441_s28, 5  ;;  %s450_s16 = scalar_lea.hbm %s3849_s0, %s2628_s14 }
  0x46   : > { %s451_s24 = sshll.u32 %s450_s16, 4  ;;  %s445_s3 = scalar_lea.vmem [#allocation6], %s2195_s1  ;;  %s452_s24 = int_to_ptr.hbm [resolvable:$true] %s451_s24 }
  0x47   : > { %s453_s7 = sshll.u32 %s445_s3, 4  ;;  %p2819_p2 = pnand %p2832_p11, %p3559_p10  ;;  %s454_s7 = int_to_ptr.vmem [resolvable:$true] %s453_s7 }
  0x48   : > { %s442_s18 = scalar_lea.sflag [#allocation7], %s441_s28  ;;  %s3361_s5 = smov 128  }
  0x49   : > { %s3362_s10 = smov 8   ;;  %465 = sbr.rel (%p3504_p4) target bundleno = 2233 (0x8b9), region = 68 }
  0x4a   : > { %2821 = dma.hbm_to_vmem [thread:$0]  (!%p2819_p2), %s452_s24, 512, %s454_s7, %s442_s18, %s3361_s5, %s3361_s5, %s3362_s10  }
  0x4b   : > { %s467_s9 = sand.u32 (!%p3504_p4), 1, %s3323_s25  }
  0x4c   : > { %s2199_s12 = sshll.u32 (!%p3504_p4), %s467_s9, 5  ;;  %s468_s4 = scalar_lea.sflag (!%p3504_p4), [#allocation7], %s467_s9 }
  0x4d   : > { %s3609_s14 = scalar_lea.vmem (!%p3504_p4), [#allocation6], %s2199_s12 }
  0x4e   : > { %3286 = dma.done.wait (%p3569_p13), %s468_s4, 512  }
  0x4f   : > { %3288 = vsyncadd (%p3569_p13), %s468_s4, 4294966784 }
  0x50   : > { %3290 = dma.done.wait (%p3492_p1), [#allocation10], 3088  }
  0x51   : > { %3292 = vsyncadd (%p3492_p1), [#allocation10], 4294964208 }
  0x52   : > { %3294 = dma.done.wait (%p3492_p1), [#allocation13], 1040  }
  0x53   : > { %3296 = vsyncadd (%p3492_p1), [#allocation13], 4294966256 }
  0x54   : > { %3298 = dma.done.wait (%p3492_p1), [#allocation16], 8192  }
  0x55   : > { %3300 = vsyncadd (%p3492_p1), [#allocation16], 4294959104  ;;  %s540_s3 = sand.u32 1, %s3311_s22   ;;  %s3901_s20 = sld [smem:[#allocation24_spill]] }
  0x56   : > { %s2206_s7 = sshll.u32 %s540_s3, 4 }
  0x57   : > { %s3630_s10 = scalar_lea.vmem [#allocation18], %s2206_s7 }
  0x5b   : > { %p2207_p4 = scmp.ne.s32.totalorder %s3901_s20, 0 }
  0x5c   : > { %s3902_s9 = sld [smem:[#allocation29_spill]] (!%p2207_p4) }
  0x5d   : > { %548 = sbr.rel (%p2207_p4) target bundleno = 536 (0x218), region = 100 }
  0x62   : > { %v553_v0 = vld [vmem:[%s3609_s14 + $0x10] sm:$0xff]  ;;  %v551_v1 = vld [vmem:[%s3609_s14] sm:$0xff]  ;;  %v554_v2 = vld [vmem:[%s3609_s14 + $0x18] sm:$0xff]  ;;  %v3363_v4 = vmov 128.0  }
  0x63   : > { %559 = vadd.xlane.f32.xlu1 %v553_v0  ;;  %555 = vadd.xlane.f32.xlu0 %v551_v1  ;;  %v552_v3 = vld [vmem:[%s3609_s14 + $0x8] sm:$0xff]  ;;  %2951 = vrcp.f32 %v3363_v4  ;;  %v2651_v28 = vld [vmem:[#allocation11 + $0xb0] sm:$0xf0]  ;;  %v2296_v31 = vld [vmem:[#allocation11 + $0xb4] sm:$0xf0] }
  0x64   : > { %v2294_v27 = vld [vmem:[#allocation11 + $0xa8] sm:$0xf]  ;;  %v2650_v29 = vld [vmem:[#allocation11 + $0xac] sm:$0xf]  ;;  %v2302_v32 = vld [vmem:[#allocation11 + $0xb0] sm:$0xf] }
  0x65   : > { %v2295_v30 = vor.u32 %v2651_v28, %v2294_v27  ;;  %v2652_v33 = vld [vmem:[#allocation11 + $0xb8] sm:$0xf0]  ;;  %v2299_v34 = vor.u32 %v2650_v29, %v2296_v31  ;;  %v2282_v36 = vld [vmem:[#allocation11 + $0x90] sm:$0xf]  ;;  %v2647_v38 = vld [vmem:[#allocation11 + $0x94] sm:$0xf] }
  0x66   : > { %v2303_v35 = vor.u32 %v2652_v33, %v2302_v32  ;;  %v2648_v37 = vld [vmem:[#allocation11 + $0x98] sm:$0xf0]  ;;  %v2284_v40 = vld [vmem:[#allocation11 + $0x9c] sm:$0xf0]  ;;  %v2290_v41 = vld [vmem:[#allocation11 + $0x98] sm:$0xf] }
  0x67   : > { %818 = vmatpush.bf16.msra.mxu0 %v2295_v30  ;;  %2763 = vmatpush.bf16.msra.mxu3 %v2295_v30  ;;  %v2283_v39 = vor.u32 %v2648_v37, %v2282_v36  ;;  %v2649_v42 = vld [vmem:[#allocation11 + $0xa0] sm:$0xf0]  ;;  %v2287_v43 = vor.u32 %v2647_v38, %v2284_v40  ;;  %v2270_v45 = vld [vmem:[#allocation11 + $0x78] sm:$0xf]  ;;  %v2644_v47 = vld [vmem:[#allocation11 + $0x7c] sm:$0xf] }
  0x68   : > { %837 = vmatpush.bf16.msra.mxu1 %v2299_v34  ;;  %856 = vmatpush.bf16.msra.mxu2 %v2303_v35  ;;  %v2291_v44 = vor.u32 %v2649_v42, %v2290_v41  ;;  %v2645_v46 = vld [vmem:[#allocation11 + $0x80] sm:$0xf0]  ;;  %v2272_v49 = vld [vmem:[#allocation11 + $0x84] sm:$0xf0]  ;;  %v2278_v50 = vld [vmem:[#allocation11 + $0x80] sm:$0xf] }
  0x69   : > { %v2952_v5 = vpop.eup %2951  ;;  %v2271_v48 = vor.u32 %v2645_v46, %v2270_v45  ;;  %v2646_v51 = vld [vmem:[#allocation11 + $0x88] sm:$0xf0]  ;;  %v2275_v52 = vor.u32 %v2644_v47, %v2272_v49  ;;  %v2258_v54 = vld [vmem:[#allocation11 + $0x60] sm:$0xf]  ;;  %v2641_v56 = vld [vmem:[#allocation11 + $0x64] sm:$0xf] }
  0x6a   : > { %v564_v6 = vmul.f32 128.0, %v2952_v5  ;;  %vm568_vm0 = vweird.f32 %v2952_v5  ;;  %v2279_v53 = vor.u32 %v2646_v51, %v2278_v50  ;;  %v2642_v55 = vld [vmem:[#allocation11 + $0x68] sm:$0xf0]  ;;  %v2260_v58 = vld [vmem:[#allocation11 + $0x6c] sm:$0xf0] }
  0x6b   : > { %561 = vadd.xlane.f32.xlu1 %v554_v2  ;;  %557 = vadd.xlane.f32.xlu0 %v552_v3  ;;  %v2259_v57 = vor.u32 %v2642_v55, %v2258_v54  ;;  %v2266_v59 = vld [vmem:[#allocation11 + $0x68] sm:$0xf]  ;;  %v2643_v60 = vld [vmem:[#allocation11 + $0x70] sm:$0xf0]  ;;  %v2263_v61 = vor.u32 %v2641_v56, %v2260_v58  ;;  %v2254_v4 = vld [vmem:[#allocation11 + $0x50] sm:$0xf] }
  0x6c   : > { %v565_v7 = vsub.f32 1.0, %v564_v6  ;;  %819 = vmatpush.bf16.msra.mxu0 %v2283_v39  ;;  %2764 = vmatpush.bf16.msra.mxu3 %v2283_v39  ;;  %v2267_v62 = vor.u32 %v2643_v60, %v2266_v59  ;;  %v2246_v63 = vld [vmem:[#allocation11 + $0x48] sm:$0xf]  ;;  %v2230_v27 = vld [vmem:[#allocation11 + $0x20] sm:$0xf] }
  0x6d   : > { %838 = vmatpush.bf16.msra.mxu1 %v2287_v43  ;;  %857 = vmatpush.bf16.msra.mxu2 %v2291_v44  ;;  %v2634_v28 = vld [vmem:[#allocation11 + $0x28] sm:$0xf0]  ;;  %v2210_v33 = vld [vmem:[#allocation11] sm:$0xf]  ;;  %v2629_v35 = vld [vmem:[#allocation11 + $0x4] sm:$0xf] }
  0x6e   : > { %v566_v8 = vmul.f32 %v2952_v5, %v565_v7  ;;  %v2231_v32 = vor.u32 %v2634_v28, %v2230_v27  ;;  %v2630_v34 = vld [vmem:[#allocation11 + $0x8] sm:$0xf0]  ;;  %v2212_v39 = vld [vmem:[#allocation11 + $0xc] sm:$0xf0]  ;;  %v2218_v40 = vld [vmem:[#allocation11 + $0x8] sm:$0xf] }
  0x6f   : > { %v2211_v38 = vor.u32 %v2630_v34, %v2210_v33  ;;  %v2631_v41 = vld [vmem:[#allocation11 + $0x10] sm:$0xf0]  ;;  %v2215_v42 = vor.u32 %v2629_v35, %v2212_v39 }
  0x70   : > { %v567_v9 = vadd.f32 %v2952_v5, %v566_v8  ;;  %820 = vmatpush.bf16.msra.mxu0 %v2271_v48  ;;  %2765 = vmatpush.bf16.msra.mxu3 %v2271_v48  ;;  %v2234_v8 = vld [vmem:[#allocation11 + $0x30] sm:$0xf]  ;;  %v2219_v43 = vor.u32 %v2631_v41, %v2218_v40 }
  0x71   : > { %839 = vmatpush.bf16.msra.mxu1 %v2275_v52  ;;  %858 = vmatpush.bf16.msra.mxu2 %v2279_v53 }
  0x72   : > { %v3637_v10 = vsel %vm568_vm0, %v2952_v5, %v567_v9  ;;  %v2640_v5 = vld [vmem:[#allocation11 + $0x58] sm:$0xf0] }
  0x73   : > { %v2255_v7 = vor.u32 %v2640_v5, %v2254_v4  ;;  %v2636_v9 = vld [vmem:[#allocation11 + $0x38] sm:$0xf0] }
  0x74   : > { %821 = vmatpush.bf16.msra.mxu0 %v2259_v57  ;;  %2766 = vmatpush.bf16.msra.mxu3 %v2259_v57 }
  0x75   : > { %840 = vmatpush.bf16.msra.mxu1 %v2263_v61  ;;  %859 = vmatpush.bf16.msra.mxu2 %v2267_v62 }
  0x79   : > { %860 = vmatpush.bf16.msra.mxu2 %v2255_v7 }
  0xd6   : > { %v560_v11 = vpop.xlane.xlu1 %559  ;;  %v556_v12 = vpop.xlane.xlu0 %555 }
  0xd7   : > { %v572_v13 = vmul.f32 %v3637_v10, %v560_v11  ;;  %v570_v14 = vmul.f32 %v3637_v10, %v556_v12  ;;  %v2635_v11 = vld [vmem:[#allocation11 + $0x34] sm:$0xf]  ;;  %v2235_v12 = vor.u32 %v2636_v9, %v2234_v8 }
  0xd9   : > { %v3641_v15 = vsub.f32 %v553_v0, %v572_v13  ;;  %v3643_v16 = vsub.f32 %v551_v1, %v570_v14  ;;  %v2639_v0 = vld [vmem:[#allocation11 + $0x50] sm:$0xf0]  ;;  %v2638_v1 = vld [vmem:[#allocation11 + $0x4c] sm:$0xf]  ;;  %v2236_v13 = vld [vmem:[#allocation11 + $0x3c] sm:$0xf0] }
  0xda   : > { %v2242_v14 = vld [vmem:[#allocation11 + $0x38] sm:$0xf] }
  0xdb   : > { %v580_v17 = vmul.f32 %v3641_v15, %v3641_v15  ;;  %v578_v18 = vmul.f32 %v3643_v16, %v3643_v16 }
  0xdd   : > { %586 = vadd.xlane.f32.xlu0 %v580_v17  ;;  %582 = vadd.xlane.f32.xlu2 %v578_v18  ;;  %v2637_v17 = vld [vmem:[#allocation11 + $0x40] sm:$0xf0]  ;;  %v2239_v18 = vor.u32 %v2635_v11, %v2236_v13  ;;  %v2949_v13 = vld [vmem:[#allocation9] ss:$0 sm:$0xff] }
  0xde   : > { %v562_v19 = vpop.xlane.xlu1 %561  ;;  %v558_v20 = vpop.xlane.xlu0 %557 }
  0xdf   : > { %v573_v21 = vmul.f32 %v3637_v10, %v562_v19  ;;  %v571_v22 = vmul.f32 %v3637_v10, %v558_v20  ;;  %v2243_v19 = vor.u32 %v2637_v17, %v2242_v14  ;;  %v2222_v20 = vld [vmem:[#allocation11 + $0x18] sm:$0xf] }
  0xe1   : > { %v3651_v23 = vsub.f32 %v554_v2, %v573_v21  ;;  %v3653_v24 = vsub.f32 %v552_v3, %v571_v22  ;;  %v2247_v2 = vor.u32 %v2639_v0, %v2246_v63  ;;  %v2248_v3 = vld [vmem:[#allocation11 + $0x54] sm:$0xf0]  ;;  %861 = vmatpush.bf16.msra.mxu2 %v2243_v19  ;;  %v2633_v21 = vld [vmem:[#allocation11 + $0x20] sm:$0xf0]  ;;  %v2632_v22 = vld [vmem:[#allocation11 + $0x1c] sm:$0xf] }
  0xe2   : > { %v2251_v6 = vor.u32 %v2638_v1, %v2248_v3 }
  0xe3   : > { %v581_v25 = vmul.f32 %v3651_v23, %v3651_v23  ;;  %v579_v26 = vmul.f32 %v3653_v24, %v3653_v24  ;;  %822 = vmatpush.bf16.msra.mxu0 %v2247_v2  ;;  %2767 = vmatpush.bf16.msra.mxu3 %v2247_v2 }
  0xe4   : > { %841 = vmatpush.bf16.msra.mxu1 %v2251_v6 }
  0xe5   : > { %588 = vadd.xlane.f32.xlu1 %v581_v25  ;;  %584 = vadd.xlane.f32.xlu2 %v579_v26  ;;  %v2223_v25 = vor.u32 %v2633_v21, %v2222_v20  ;;  %v2224_v26 = vld [vmem:[#allocation11 + $0x24] sm:$0xf0] }
  0xe6   : > { %v2227_v31 = vor.u32 %v2632_v22, %v2224_v26  ;;  %862 = vmatpush.bf16.msra.mxu2 %v2231_v32  ;;  %v2950_v22 = vld [vmem:[%s3902_s9] ss:$0 sm:$0xff] }
  0xe7   : > { %823 = vmatpush.bf16.msra.mxu0 %v2235_v12  ;;  %2768 = vmatpush.bf16.msra.mxu3 %v2235_v12 }
  0xe8   : > { %842 = vmatpush.bf16.msra.mxu1 %v2239_v18 }
  0xea   : > { %863 = vmatpush.bf16.msra.mxu2 %v2219_v43 }
  0xeb   : > { %824 = vmatpush.bf16.msra.mxu0 %v2223_v25  ;;  %2769 = vmatpush.bf16.msra.mxu3 %v2223_v25 }
  0xec   : > { %843 = vmatpush.bf16.msra.mxu1 %v2227_v31 }
  0xef   : > { %825 = vmatpush.bf16.msra.mxu0 %v2211_v38  ;;  %2770 = vmatpush.bf16.msra.mxu3 %v2211_v38 }
  0xf0   : > { %844 = vmatpush.bf16.msra.mxu1 %v2215_v42 }
 0x150   : > { %v583_v29 = vpop.xlane.xlu2 %582  ;;  %v587_v30 = vpop.xlane.xlu0 %586 }
 0x151   : > { %v590_v36 = vmul.f32 %v583_v29, %v3637_v10  ;;  %v592_v37 = vmul.f32 %v587_v30, %v3637_v10 }
 0x153   : > { %v594_v44 = vadd.f32 1e-05, %v590_v36  ;;  %v596_v45 = vadd.f32 1e-05, %v592_v37 }
 0x155   : > { %2953 = vrsqrt.f32 %v594_v44  ;;  %vm624_vm1 = vweird.f32 %v596_v45  ;;  %vm604_vm5 = vweird.f32 %v594_v44 }
 0x156   : > { %2955 = vrsqrt.f32 %v596_v45 }
 0x158   : > { %v589_v46 = vpop.xlane.xlu1 %588  ;;  %v585_v47 = vpop.xlane.xlu2 %584 }
 0x159   : > { %v593_v48 = vmul.f32 %v589_v46, %v3637_v10  ;;  %v591_v49 = vmul.f32 %v585_v47, %v3637_v10 }
 0x15b   : > { %v2954_v50 = vpop.eup %2953  ;;  %v597_v51 = vadd.f32 1e-05, %v593_v48  ;;  %v595_v52 = vadd.f32 1e-05, %v591_v49 }
 0x15c   : > { %v2956_v53 = vpop.eup %2955  ;;  %v599_v54 = vmul.f32 %v2954_v50, %v594_v44  ;;  %vm605_vm3 = vweird.f32 %v2954_v50 }
 0x15d   : > { %v619_v55 = vmul.f32 %v2956_v53, %v596_v45  ;;  %2957 = vrsqrt.f32 %v597_v51  ;;  %vm625_vm2 = vweird.f32 %v2956_v53  ;;  %vm606_vm6 = vmor %vm604_vm5, %vm605_vm3  ;;  %vm634_vm7 = vweird.f32 %v597_v51 }
 0x15e   : > { %v600_v56 = vmul.f32 %v2954_v50, %v599_v54  ;;  %2959 = vrsqrt.f32 %v595_v52  ;;  %vm626_vm4 = vmor %vm624_vm1, %vm625_vm2  ;;  %vm614_vm11 = vweird.f32 %v595_v52 }
 0x15f   : > { %v620_v57 = vmul.f32 %v2956_v53, %v619_v55 }
 0x160   : > { %v601_v58 = vmul.f32 0.5, %v600_v56 }
 0x161   : > { %v621_v59 = vmul.f32 0.5, %v620_v57 }
 0x162   : > { %v602_v60 = vsub.f32 1.5, %v601_v58 }
 0x163   : > { %v2958_v61 = vpop.eup %2957  ;;  %v622_v62 = vsub.f32 1.5, %v621_v59 }
 0x164   : > { %v2960_v63 = vpop.eup %2959  ;;  %v629_v0 = vmul.f32 %v2958_v61, %v597_v51  ;;  %v603_v10 = vmul.f32 %v2954_v50, %v602_v60  ;;  %vm635_vm8 = vweird.f32 %v2958_v61 }
 0x165   : > { %v623_v1 = vmul.f32 %v2956_v53, %v622_v62  ;;  %v609_v2 = vmul.f32 %v2960_v63, %v595_v52  ;;  %vm636_vm9 = vmor %vm634_vm7, %vm635_vm8  ;;  %vm615_vm10 = vweird.f32 %v2960_v63 }
 0x166   : > { %v630_v3 = vmul.f32 %v2958_v61, %v629_v0  ;;  %v607_v7 = vsel %vm606_vm6, %v2954_v50, %v603_v10  ;;  %vm616_vm12 = vmor %vm614_vm11, %vm615_vm10 }
 0x167   : > { %v610_v4 = vmul.f32 %v2960_v63, %v609_v2  ;;  %v627_v5 = vsel %vm626_vm4, %v2956_v53, %v623_v1  ;;  %v638_v14 = vmul.f32 %v607_v7, %v3643_v16 }
 0x168   : > { %v631_v6 = vmul.f32 0.5, %v630_v3  ;;  %v640_v11 = vmul.f32 %v627_v5, %v3641_v15 }
 0x169   : > { %v611_v8 = vmul.f32 0.5, %v610_v4  ;;  %v645_v26 = vmul.f32 %v2949_v13, %v638_v14 }
 0x16a   : > { %v632_v9 = vsub.f32 1.5, %v631_v6  ;;  %v647_v25 = vmul.f32 %v2949_v13, %v640_v11 }
 0x16b   : > { %v612_v12 = vsub.f32 1.5, %v611_v8  ;;  %v652_v30 = vadd.f32 %v2950_v22, %v645_v26 }
 0x16c   : > { %v633_v17 = vmul.f32 %v2958_v61, %v632_v9  ;;  %v654_v29 = vadd.f32 %v2950_v22, %v647_v25 }
 0x16d   : > { %v613_v18 = vmul.f32 %v2960_v63, %v612_v12 }
 0x16e   : > { %v637_v19 = vsel %vm636_vm9, %v2958_v61, %v633_v17 }
 0x16f   : > { %v641_v20 = vmul.f32 %v637_v19, %v3651_v23  ;;  %v617_v21 = vsel %vm616_vm12, %v2960_v63, %v613_v18 }
 0x170   : > { %v639_v15 = vmul.f32 %v617_v21, %v3653_v24 }
 0x171   : > { %v648_v27 = vmul.f32 %v2949_v13, %v641_v20 }
 0x172   : > { %v646_v28 = vmul.f32 %v2949_v13, %v639_v15 }
 0x173   : > { %v655_v16 = vadd.f32 %v2950_v22, %v648_v27 }
 0x174   : > { %v653_v31 = vadd.f32 %v2950_v22, %v646_v28 }
 0x175   : > { %v657_v32 = vpack.c.bf16 %v655_v16, %v654_v29 }
 0x176   : > { %v656_v33 = vpack.c.bf16 %v653_v31, %v652_v30 }
 0x177   : > { %831 = vmatmul.bf16.vlgmr.msra.gmra.mxu3 %v657_v32 }
 0x178   : > { %826 = vmatmul.bf16.vlgmr.msra.gmra.mxu0 %v656_v33  ;;  %845 = vmatmul.bf16.vlgmr.msra.gmra.mxu1 %v656_v33 }
 0x179   : > { %864 = vmatmul.bf16.vlgmr.msra.gmra.mxu2 %v656_v33 }
 0x188   : > { %850 = vmatmul.bf16.gmra.mxu1 %v657_v32 }
 0x189   : > { %869 = vmatmul.bf16.gmra.mxu2 %v657_v32 }
 0x1f5   : > { %v827_v23 = vpop.f32.mrf.mxu0  ;;  %v846_v34 = vpop.f32.mrf.mxu1 }
 0x1fa   : > { %v832_v35 = vpop.f32.mrf.mxu3 }
 0x1fc   : > { %v865_v36 = vpop.f32.mrf.mxu2 }
 0x1fd   : > { %v829_v24 = vpop.f32.mrf.mxu0  ;;  %v848_v37 = vpop.f32.mrf.mxu1 }
 0x1fe   : > { %v2733_v38 = vpack.c.bf16 %v829_v24, %v827_v23  ;;  %v2743_v39 = vpack.c.bf16 %v848_v37, %v846_v34 }
 0x200   : > { %2734 = vst [vmem:[#allocation2] sm:$0xff] %v2733_v38  }
 0x201   : > { %2744 = vst [vmem:[#allocation3] sm:$0xff] %v2743_v39  }
 0x202   : > { %v834_v40 = vpop.f32.mrf.mxu3 }
 0x203   : > { %v2738_v41 = vpack.c.bf16 %v834_v40, %v832_v35 }
 0x204   : > { %v867_v42 = vpop.f32.mrf.mxu2 }
 0x205   : > { %2760 = vst [vmem:[#allocation2 + $0x8] sm:$0xff] %v2738_v41   ;;  %v2753_v43 = vpack.c.bf16 %v867_v42, %v865_v36  ;;  %v851_v44 = vpop.f32.mrf.mxu1 }
 0x207   : > { %2754 = vst [vmem:[#allocation4 + $0x8] sm:$0xff] %v2753_v43  }
 0x20c   : > { %v870_v45 = vpop.f32.mrf.mxu2 }
 0x20d   : > { %v853_v46 = vpop.f32.mrf.mxu1 }
 0x20e   : > { %v2748_v47 = vpack.c.bf16 %v853_v46, %v851_v44 }
 0x210   : > { %2761 = vst [vmem:[#allocation3 + $0x8] sm:$0xff] %v2748_v47  }
 0x214   : > { %v872_v48 = vpop.f32.mrf.mxu2 }
 0x215   : > { %v2758_v49 = vpack.c.bf16 %v872_v48, %v870_v45 }
 0x217   : > { %2762 = vst [vmem:[#allocation4] sm:$0xff] %v2758_v49  }
 0x218 PF: > { %v2655_v50 = vld [vmem:[#allocation3 + $0x8] sm:$0xff]  ;;  %s3903_s6 = sld [smem:[#allocation24_spill]]  ;;  %s3364_s1 = smov 96   ;;  %v2654_v52 = vld [vmem:[#allocation3] sm:$0xff]  ;;  %v3676_v53 = vld [vmem:[#allocation4 + $0x8] sm:$0xff]  ;;  %vm932_vm13 = vcmask 261120  }
 0x219   : > { %1014 = vrot.lane.b32.xlu0 %v2655_v50, %s3364_s1  ;;  %s3365_s24 = smov 64   ;;  %s3366_s18 = smov 32   ;;  %v940_v54 = vsel %vm932_vm13, %v2655_v50, 0  ;;  %v937_v55 = vsel %vm932_vm13, %v2654_v52, 0  ;;  %vm1093_vm14 = vcmask 523520   ;;  %vm1179_vm15 = vcmask 785920  }
 0x21a   : > { %948 = vmatpush.bf16.xpose.msra.mxu0 %v940_v54  ;;  %vm1265_vm0 = vcmask 1048320   ;;  %s3904_s20 = sld [smem:[#allocation32_spill]] }
 0x21b   : > { %s3905_s12 = sld [smem:[#allocation33_spill]] }
 0x21c   : > { %s3910_s9 = sld [smem:[#allocation39_spill]] }
 0x21e   : > { %s2304_s2 = sshll.u32 %s3903_s6, 4  ;;  %v3690_v62 = vld [vmem:[#allocation4] sm:$0xff] }
 0x21f   : > { %s903_s28 = sshra.s32 %s2304_s2, 3  ;;  %1060 = vrot.lane.b32.xlu2 %v3690_v62, %s3364_s1  ;;  %996 = vmatpush.bf16.msra.mxu1 %v3690_v62  ;;  %s900_s5 = scalar_lea.vmem %s3609_s14, %s2304_s2 [#allocation6] }
 0x220   : > { %s2305_s27 = sshll.u32 %s903_s28, 2  ;;  %s3906_s28 = sld [smem:[#allocation36_spill]] }
 0x221   : > { %s906_s16 = scalar_lea.vmem [#allocation2], %s2305_s27  ;;  %1012 = vrot.lane.b32.xlu0 %v2654_v52, %s3364_s1  ;;  %s3909_s14 = sld [smem:[#allocation38_spill]] }
 0x222   : > { %v2653_v51 = vld [vmem:[%s906_s16] sm:$0xff]  ;;  %949 = vmatpush.bf16.xpose.msra.mxu0 %v937_v55  ;;  %s2020_s16 = scalar_lea.sflag [#allocation8], %s540_s3  ;;  %s3233_s7 = scalar_lea.hbm %s3910_s9, 64 }
 0x223   : > { %1010 = vrot.lane.b32.xlu1 %v2653_v51, %s3364_s1  ;;  %997 = vmatpush.bf16.msra.mxu1 %v3676_v53 }
 0x227   : > { %1098 = vrot.lane.b32.xlu2 %v2654_v52, %s3365_s24 }
 0x229   : > { %1058 = vrot.lane.b32.xlu0 %v3676_v53, %s3364_s1  ;;  %2318 = vmatmul.msk.bf16.vlgmr.msra.gmra.mxu0 %vm932_vm13, %v2653_v51 }
 0x231   : > { %1100 = vrot.lane.b32.xlu0 %v2655_v50, %s3365_s24 }
 0x239   : > { %1186 = vrot.lane.b32.xlu0 %v2655_v50, %s3366_s18 }
 0x241   : > { %1184 = vrot.lane.b32.xlu0 %v2654_v52, %s3366_s18 }
 0x249   : > { %1182 = vrot.lane.b32.xlu0 %v2653_v51, %s3366_s18 }
 0x279   : > { %v1061_v4 = vpop.permute.xlu2 %1060 }
 0x27a   : > { %1073 = vmatpush.bf16.msra.mxu3 %v1061_v4 }
 0x281   : > { %v1099_v6 = vpop.permute.xlu2 %1098 }
 0x282   : > { %v1106_v7 = vsel %vm932_vm13, %v1099_v6, 0 }
 0x28b   : > { %v1015_v56 = vpop.permute.xlu0 %1014 }
 0x28c   : > { %v1023_v57 = vsel %vm932_vm13, %v1015_v56, 0 }
 0x28d   : > { %1031 = vmatpush.bf16.xpose.msra.mxu2 %v1023_v57 }
 0x293   : > { %v1013_v58 = vpop.permute.xlu0 %1012 }
 0x294   : > { %v1020_v59 = vsel %vm932_vm13, %v1013_v58, 0 }
 0x295   : > { %1032 = vmatpush.bf16.xpose.msra.mxu2 %v1020_v59  ;;  %v1011_v60 = vpop.permute.xlu1 %1010 }
 0x29b   : > { %v1059_v61 = vpop.permute.xlu0 %1058 }
 0x29c   : > { %2328 = vmatmul.msk.bf16.vlgmr.msra.gmra.mxu2 %vm932_vm13, %v1011_v60  ;;  %1074 = vmatpush.bf16.msra.mxu3 %v1059_v61 }
 0x2a3   : > { %v1101_v63 = vpop.permute.xlu0 %1100 }
 0x2a4   : > { %v1109_v5 = vsel %vm932_vm13, %v1101_v63, 0 }
 0x2a5   : > { %1117 = vmatpush.bf16.xpose.msrb.mxu3 %v1109_v5 }
 0x2a6   : > { %v3703_v11 = vpop.f32.mrf.mxu0 }
 0x2a7   : > { %v956_v52 = vsel %vm932_vm13, %v3703_v11, -inf }
 0x2ab   : > { %v1187_v0 = vpop.permute.xlu0 %1186 }
 0x2ac   : > { %v1195_v10 = vsel %vm932_vm13, %v1187_v0, 0 }
 0x2ad   : > { %1203 = vmatpush.bf16.xpose.msrb.mxu0 %v1195_v10  ;;  %1118 = vmatpush.bf16.xpose.msrb.mxu3 %v1106_v7 }
 0x2ae   : > { %v3706_v14 = vpop.f32.mrf.mxu0 }
 0x2b3   : > { %v1185_v1 = vpop.permute.xlu0 %1184 }
 0x2b4   : > { %v1192_v2 = vsel %vm932_vm13, %v1185_v1, 0 }
 0x2b5   : > { %1204 = vmatpush.bf16.xpose.msrb.mxu0 %v1192_v2 }
 0x2bb   : > { %v1183_v3 = vpop.permute.xlu0 %1182 }
 0x2bc   : > { %2332 = vmatmul.msk.bf16.vlgmr.msrb.gmra.mxu0 %vm932_vm13, %v1183_v3 }
 0x31f   : > { %v1034_v8 = vpop.f32.mrf.mxu2 }
 0x320   : > { %v1039_v9 = vsel %vm932_vm13, %v1034_v8, -inf }
 0x321   : > { %1040 = vmax.xlane.f32.xlu1 %v1039_v9 }
 0x327   : > { %v1036_v12 = vpop.f32.mrf.mxu2 }
 0x328   : > { %v1042_v13 = vsel %vm932_vm13, %v1036_v12, -inf }
 0x329   : > { %1043 = vmax.xlane.f32.xlu2 %v1042_v13 }
 0x339   : > { %v1206_v17 = vpop.f32.mrf.mxu0 }
 0x33a   : > { %v1211_v18 = vsel %vm932_vm13, %v1206_v17, -inf }
 0x33b   : > { %1212 = vmax.xlane.f32.xlu0 %v1211_v18 }
 0x341   : > { %1096 = vrot.lane.b32.xlu2 %v2653_v51, %s3365_s24  ;;  %v1208_v19 = vpop.f32.mrf.mxu0  ;;  %v959_v51 = vsel %vm932_vm13, %v3706_v14, -inf }
 0x342   : > { %v1214_v20 = vsel %vm932_vm13, %v1208_v19, -inf }
 0x343   : > { %1215 = vmax.xlane.f32.xlu1 %v1214_v20 }
 0x34f   : > { %1230 = vrot.lane.b32.xlu0 %v3676_v53, %s3366_s18 }
 0x35c   : > { %1146 = vrot.lane.b32.xlu1 %v3690_v62, %s3365_s24 }
 0x394   : > { %v1041_v21 = vpop.xlane.xlu1 %1040 }
 0x395   : > { %v1045_v22 = vsub.f32 %v1034_v8, %v1041_v21 }
 0x397   : > { %v1047_v25 = vmul.f32 1.442695, %v1045_v22 }
 0x399   : > { %2965 = vpow2.f32 %v1047_v25 }
 0x39c   : > { %v1044_v15 = vpop.xlane.xlu2 %1043 }
 0x39d   : > { %v1046_v26 = vsub.f32 %v1036_v12, %v1044_v15 }
 0x39f   : > { %v2966_v27 = vpop.eup %2965  ;;  %v1049_v28 = vmul.f32 1.442695, %v1046_v26 }
 0x3a0   : > { %v1051_v29 = vsel %vm932_vm13, %v2966_v27, 0.0 }
 0x3a1   : > { %2967 = vpow2.f32 %v1049_v28  ;;  %1052 = vadd.xlane.f32.xlu0 %v1051_v29 }
 0x3a4   : > { %v1097_v32 = vpop.permute.xlu2 %1096 }
 0x3a7   : > { %v2968_v16 = vpop.eup %2967 }
 0x3a8   : > { %v1057_v30 = vpack.c.bf16 %v2968_v16, %v2966_v27  ;;  %v1054_v54 = vsel %vm932_vm13, %v2968_v16, 0.0 }
 0x3aa   : > { %2329 = vmatmul.msk.bf16.vlgmr.msra.gmra.mxu3 %vm932_vm13, %v1057_v30 }
 0x3ae   : > { %v1213_v36 = vpop.xlane.xlu0 %1212 }
 0x3af   : > { %v1217_v24 = vsub.f32 %v1206_v17, %v1213_v36  ;;  %v2665_v36 = vld [vmem:[#allocation12 + $0x38] sm:$0xff] }
 0x3b0   : > { %1339 = vmatpush.bf16.msrb.mxu1 %v2665_v36  ;;  %v2410_v36 = vld [vmem:[#allocation15 + $0xb0] sm:$0xf0] }
 0x3b1   : > { %v1219_v37 = vmul.f32 1.442695, %v1217_v24  ;;  %v2664_v24 = vld [vmem:[#allocation12 + $0x30] sm:$0xff] }
 0x3b4   : > { %1340 = vmatpush.bf16.msrb.mxu1 %v2664_v24 }
 0x3b6   : > { %v1216_v31 = vpop.xlane.xlu1 %1215 }
 0x3b7   : > { %v1218_v33 = vsub.f32 %v1208_v19, %v1216_v31 }
 0x3b9   : > { %v1221_v23 = vmul.f32 1.442695, %v1218_v33 }
 0x3ba   : > { %2330 = vmatmul.msk.bf16.vlgmr.msrb.gmra.mxu3 %vm932_vm13, %v1097_v32 }
 0x3bb   : > { %2969 = vpow2.f32 %v1221_v23 }
 0x3bc   : > { %2971 = vpow2.f32 %v1219_v37 }
 0x3c1   : > { %v2970_v34 = vpop.eup %2969  ;;  %v1231_v40 = vpop.permute.xlu0 %1230 }
 0x3c2   : > { %v1226_v35 = vsel %vm932_vm13, %v2970_v34, 0.0  ;;  %v2972_v38 = vpop.eup %2971 }
 0x3c3   : > { %1227 = vadd.xlane.f32.xlu0 %v1226_v35  ;;  %v1229_v39 = vpack.c.bf16 %v2970_v34, %v2972_v38  ;;  %v1223_v55 = vsel %vm932_vm13, %v2972_v38, 0.0 }
 0x3ce   : > { %v1147_v50 = vpop.permute.xlu1 %1146 }
 0x3cf   : > { %1159 = vmatpush.bf16.msra.mxu3 %v1147_v50  ;;  %v2659_v50 = vld [vmem:[#allocation12 + $0x8] sm:$0xff] }
 0x414   : > { %v1053_v41 = vpop.xlane.xlu0 %1052 }
 0x415   : > { %2973 = vrcp.f32 %v1053_v41 }
 0x41b   : > { %v2974_v42 = vpop.eup %2973 }
 0x42d   : > { %v1076_v43 = vpop.f32.mrf.mxu3 }
 0x42e   : > { %v1083_v44 = vmul.f32 %v2974_v42, %v1076_v43 }
 0x430   : > { %1087 = vrot.lane.b32.xlu0 %v1083_v44, %s3366_s18 }
 0x435   : > { %v1078_v45 = vpop.f32.mrf.mxu3 }
 0x436   : > { %v1228_v16 = vpop.xlane.xlu0 %1227 }
 0x43d   : > { %v1120_v46 = vpop.f32.mrf.mxu3 }
 0x43e   : > { %v1125_v47 = vsel %vm932_vm13, %v1120_v46, -inf }
 0x43f   : > { %1126 = vmax.xlane.f32.xlu2 %v1125_v47  ;;  %v2662_v47 = vld [vmem:[#allocation12 + $0x20] sm:$0xff] }
 0x445   : > { %v1122_v48 = vpop.f32.mrf.mxu3 }
 0x446   : > { %v1128_v49 = vsel %vm932_vm13, %v1122_v48, -inf }
 0x447   : > { %1129 = vmax.xlane.f32.xlu1 %v1128_v49  ;;  %v2660_v49 = vld [vmem:[#allocation12 + $0x10] sm:$0xff] }
 0x457   : > { %1232 = vrot.lane.b32.xlu2 %v3690_v62, %s3366_s18 }
 0x460   : > { %1144 = vrot.lane.b32.xlu1 %v3676_v53, %s3365_s24 }
 0x480   : > { %960 = vmax.xlane.f32.xlu2 %v959_v51  ;;  %v2658_v51 = vld [vmem:[#allocation12] sm:$0xff] }
 0x48a   : > { %957 = vmax.xlane.f32.xlu1 %v956_v52 }
 0x492   : > { %1055 = vadd.xlane.f32.xlu1 %v1054_v54 }
 0x49a   : > { %1224 = vadd.xlane.f32.xlu1 %v1223_v55 }
 0x4a2   : > { %v1088_v41 = vpop.permute.xlu0 %1087 }
 0x4b2   : > { %v1127_v56 = vpop.xlane.xlu2 %1126 }
 0x4b3   : > { %v1131_v57 = vsub.f32 %v1120_v46, %v1127_v56  ;;  %v2663_v46 = vld [vmem:[#allocation12 + $0x28] sm:$0xff] }
 0x4b4   : > { %1341 = vmatpush.bf16.msrb.mxu1 %v2663_v46 }
 0x4b5   : > { %v1133_v58 = vmul.f32 1.442695, %v1131_v57 }
 0x4b7   : > { %2975 = vpow2.f32 %v1133_v58 }
 0x4b8   : > { %1342 = vmatpush.bf16.msrb.mxu1 %v2662_v47  ;;  %v2394_v47 = vld [vmem:[#allocation15 + $0x70] sm:$0xf0] }
 0x4ba   : > { %v1233_v53 = vpop.permute.xlu2 %1232  ;;  %v1130_v59 = vpop.xlane.xlu1 %1129 }
 0x4bb   : > { %v1132_v60 = vsub.f32 %v1122_v48, %v1130_v59  ;;  %1245 = vmatpush.bf16.msrb.mxu2 %v1233_v53  ;;  %v2661_v48 = vld [vmem:[#allocation12 + $0x18] sm:$0xff] }
 0x4bc   : > { %1343 = vmatpush.bf16.msrb.mxu1 %v2661_v48  ;;  %v2961_v59 = vld [vmem:[%s3904_s20] ss:$0 sm:$0xff] }
 0x4bd   : > { %v2976_v61 = vpop.eup %2975  ;;  %v1135_v62 = vmul.f32 1.442695, %v1132_v60  ;;  %v901_v60 = vld [vmem:[%s900_s5] sm:$0xff] }
 0x4be   : > { %v1137_v63 = vsel %vm932_vm13, %v2976_v61, 0.0 }
 0x4bf   : > { %2977 = vpow2.f32 %v1135_v62  ;;  %1246 = vmatpush.bf16.msrb.mxu2 %v1231_v40  ;;  %1138 = vadd.xlane.f32.xlu1 %v1137_v63 }
 0x4c0   : > { %1344 = vmatpush.bf16.msrb.mxu1 %v2660_v49  ;;  %v2384_v49 = vld [vmem:[#allocation15 + $0x40] sm:$0xf] }
 0x4c2   : > { %2333 = vmatmul.msk.bf16.vlgmr.msrb.gmra.mxu2 %vm932_vm13, %v1229_v39 }
 0x4c4   : > { %1345 = vmatpush.bf16.msrb.mxu1 %v2659_v50  ;;  %v2671_v50 = vld [vmem:[#allocation15 + $0x4c] sm:$0xf0] }
 0x4c5   : > { %v2978_v0 = vpop.eup %2977 }
 0x4c6   : > { %v1140_v10 = vsel %vm932_vm13, %v2978_v0, 0.0  ;;  %v1143_v2 = vpack.c.bf16 %v2978_v0, %v2976_v61  ;;  %v902_v0 = vld [vmem:[%s900_s5 + $0x8] sm:$0xff] }
 0x4c7   : > { %1141 = vadd.xlane.f32.xlu2 %v1140_v10 }
 0x4c8   : > { %1346 = vmatpush.bf16.msrb.mxu1 %v2658_v51  ;;  %v2670_v51 = vld [vmem:[#allocation15 + $0x44] sm:$0xf] }
 0x4d2   : > { %v1145_v1 = vpop.permute.xlu1 %1144 }
 0x4d3   : > { %1160 = vmatpush.bf16.msra.mxu3 %v1145_v1 }
 0x4d6   : > { %2331 = vmatmul.msk.bf16.vlgmr.msra.gmra.mxu3 %vm932_vm13, %v1143_v2 }
 0x4f3   : > { %v961_v3 = vpop.xlane.xlu2 %960 }
 0x4f4   : > { %v963_v4 = vsub.f32 %v3706_v14, %v961_v3  ;;  %v3367_v3 = vmov 128.0  }
 0x4f6   : > { %v966_v5 = vmul.f32 1.442695, %v963_v4 }
 0x4f8   : > { %2979 = vpow2.f32 %v966_v5 }
 0x4fd   : > { %v958_v6 = vpop.xlane.xlu1 %957 }
 0x4fe   : > { %v2980_v7 = vpop.eup %2979  ;;  %v962_v8 = vsub.f32 %v3703_v11, %v958_v6  ;;  %v2424_v6 = vld [vmem:[#allocation15 + $0xe0] sm:$0xf] }
 0x4ff   : > { %v971_v9 = vsel %vm932_vm13, %v2980_v7, 0.0 }
 0x500   : > { %v964_v12 = vmul.f32 1.442695, %v962_v8  ;;  %972 = vadd.xlane.f32.xlu1 %v971_v9  ;;  %v2680_v8 = vld [vmem:[#allocation15 + $0xe4] sm:$0xf] }
 0x502   : > { %2981 = vpow2.f32 %v964_v12  ;;  %v2426_v12 = vld [vmem:[#allocation15 + $0xf0] sm:$0xf0] }
 0x505   : > { %v1056_v19 = vpop.xlane.xlu1 %1055 }
 0x506   : > { %2983 = vrcp.f32 %v1056_v19  ;;  %v2678_v19 = vld [vmem:[#allocation15 + $0xc4] sm:$0xf] }
 0x508   : > { %v2982_v13 = vpop.eup %2981 }
 0x509   : > { %v968_v17 = vsel %vm932_vm13, %v2982_v13, 0.0  ;;  %v974_v18 = vpack.c.bf16 %v2980_v7, %v2982_v13  ;;  %v2681_v7 = vld [vmem:[#allocation15 + $0xec] sm:$0xf0]  ;;  %v2416_v13 = vld [vmem:[#allocation15 + $0xc0] sm:$0xf] }
 0x50a   : > { %969 = vadd.xlane.f32.xlu2 %v968_v17  ;;  %v2425_v9 = vor.u32 %v2681_v7, %v2424_v6  ;;  %v2679_v17 = vld [vmem:[#allocation15 + $0xcc] sm:$0xf0]  ;;  %v2712_v7 = vld [vmem:[#allocation15 + $0xec] sm:$0xf] }
 0x50b   : > { %2327 = vmatmul.msk.bf16.vlgmr.msra.gmra.mxu1 %vm932_vm13, %v974_v18  ;;  %v2429_v18 = vor.u32 %v2680_v8, %v2426_v12  ;;  %v2554_v8 = vld [vmem:[#allocation15 + $0xf8] sm:$0xf0]  ;;  %v2544_v12 = vld [vmem:[#allocation15 + $0xc8] sm:$0xf] }
 0x50c   : > { %v2984_v14 = vpop.eup %2983  ;;  %1517 = vmatpush.bf16.msrb.mxu3 %v2425_v9  ;;  %v2557_v9 = vor.u32 %v2712_v7, %v2554_v8  ;;  %v2697_v7 = vld [vmem:[#allocation17 + $0x78] sm:$0xff] }
 0x50d   : > { %v1084_v20 = vmul.f32 %v2984_v14, %v1078_v45  ;;  %v1225_v21 = vpop.xlane.xlu1 %1224  ;;  %v2418_v14 = vld [vmem:[#allocation15 + $0xd0] sm:$0xf0]  ;;  %1531 = vmatpush.bf16.msra.mxu0 %v2429_v18  ;;  %v2689_v8 = vld [vmem:[#allocation17 + $0x38] sm:$0xff]  ;;  %1693 = vmatpush.bf16.msra.mxu1 %v2697_v7 }
 0x50e   : > { %2985 = vrcp.f32 %v1225_v21  ;;  %v2417_v21 = vor.u32 %v2679_v17, %v2416_v13  ;;  %v2711_v13 = vld [vmem:[#allocation15 + $0xd4] sm:$0xf0]  ;;  %v2710_v17 = vld [vmem:[#allocation15 + $0xcc] sm:$0xf]  ;;  %1679 = vmatpush.bf16.msra.mxu2 %v2689_v8 }
 0x50f   : > { %v2545_v18 = vor.u32 %v2711_v13, %v2544_v12  ;;  %v2696_v13 = vld [vmem:[#allocation17 + $0x70] sm:$0xff] }
 0x510   : > { %1518 = vmatpush.bf16.msrb.mxu3 %v2417_v21  ;;  %v2709_v21 = vld [vmem:[#allocation15 + $0xb4] sm:$0xf0] }
 0x511   : > { %1694 = vmatpush.bf16.msra.mxu1 %v2696_v13 }
 0x514   : > { %v2986_v11 = vpop.eup %2985 }
 0x522   : > { %1089 = vrot.lane.b32.xlu2 %v1084_v20, %s3366_s18  ;;  %s2623_s18 = sshll.u32 %s3903_s6, 1 }
 0x532   : > { %v1139_v15 = vpop.xlane.xlu1 %1138 }
 0x533   : > { %2987 = vrcp.f32 %v1139_v15 }
 0x539   : > { %v2988_v27 = vpop.eup %2987 }
 0x53a   : > { %v1142_v26 = vpop.xlane.xlu2 %1141 }
 0x53b   : > { %2989 = vrcp.f32 %v1142_v26 }
 0x53c   : > { %2991 = vrcp.f32 %v1228_v16 }
 0x541   : > { %v2990_v30 = vpop.eup %2989 }
 0x542   : > { %v2992_v23 = vpop.eup %2991 }
 0x545   : > { %v1248_v22 = vpop.f32.mrf.mxu2 }
 0x546   : > { %v1255_v25 = vmul.f32 %v2986_v11, %v1248_v22  ;;  %v2421_v11 = vor.u32 %v2678_v19, %v2418_v14  ;;  %v2546_v19 = vld [vmem:[#allocation15 + $0xd8] sm:$0xf0] }
 0x547   : > { %v2549_v14 = vor.u32 %v2710_v17, %v2546_v19  ;;  %v2688_v17 = vld [vmem:[#allocation17 + $0x30] sm:$0xff] }
 0x548   : > { %1259 = vrot.lane.b32.xlu2 %v1255_v25, %s3364_s1  ;;  %1532 = vmatpush.bf16.msra.mxu0 %v2421_v11  ;;  %v2708_v11 = vld [vmem:[#allocation15 + $0xac] sm:$0xf] }
 0x549   : > { %1680 = vmatpush.bf16.msra.mxu2 %v2688_v17 }
 0x54d   : > { %v1250_v33 = vpop.f32.mrf.mxu2 }
 0x54e   : > { %v1256_v34 = vmul.f32 %v2992_v23, %v1250_v33  ;;  %v2408_v33 = vld [vmem:[#allocation15 + $0xa0] sm:$0xf]  ;;  %v2677_v23 = vld [vmem:[#allocation15 + $0xac] sm:$0xf0] }
 0x559   : > { %v1162_v28 = vpop.f32.mrf.mxu3 }
 0x55a   : > { %v1169_v29 = vmul.f32 %v2988_v27, %v1162_v28 }
 0x55c   : > { %1173 = vrot.lane.b32.xlu1 %v1169_v29, %s3365_s24 }
 0x561   : > { %v1164_v31 = vpop.f32.mrf.mxu3 }
 0x562   : > { %v1170_v32 = vmul.f32 %v2990_v30, %v1164_v31 }
 0x564   : > { %1175 = vrot.lane.b32.xlu0 %v1170_v32, %s3365_s24  ;;  %s3908_s24 = sld [smem:[#allocation25_spill]] }
 0x56a   : > { %s2624_s5 = sshll.u32 %s3908_s24, 2 }
 0x56b   : > { %s2031_s4 = sadd.s32 %s2624_s5, %s2623_s18 }
 0x56c   : > { %1261 = vrot.lane.b32.xlu0 %v1256_v34, %s3364_s1  ;;  %v2676_v34 = vld [vmem:[#allocation15 + $0xa4] sm:$0xf]  ;;  %s3907_s1 = smov %s3906_s28  ;;  %s2625_s15 = sshll.u32 %s2031_s4, 3 }
 0x56d   : > { %v2413_v24 = vor.u32 %v2676_v34, %v2410_v36  ;;  %v2520_v36 = vld [vmem:[#allocation15 + $0x68] sm:$0xf]  ;;  %s2033_s2 = scalar_lea.hbm %s3910_s9, %s2625_s15 }
 0x56e   : > { %s2036_s27 = sshll.u32 %s2033_s2, 4  ;;  %s2037_s27 = int_to_ptr.hbm [resolvable:$true] %s2036_s27 }
 0x56f   : > { %1533 = vmatpush.bf16.msra.mxu0 %v2413_v24  ;;  %v2705_v24 = vld [vmem:[#allocation15 + $0x74] sm:$0xf0]  ;;  %s3227_s24 = sshra.s32 %s2037_s27, 4  ;;  %s3228_s24 = int_to_ptr.hbm [resolvable:$true] %s3227_s24 }
 0x570   : > { %s3229_s18 = scalar_lea.hbm %s3228_s24, 16  ;;  %p3234_p13 = scmp.lt.s32.totalorder %s3228_s24, %s3910_s9 }
 0x571   : > { %p3230_p1 = scmp.ne.s32.totalorder %s3228_s24, %s3229_s18  ;;  %p3235_p0 = scmp.lt.s32.totalorder %s3233_s7, %s3229_s18 }
 0x573   : > { %v973_v37 = vpop.xlane.xlu1 %972  ;;  %p3231_p10 = pnand %p3230_p1, %p3584_p8  ;;  %p3236_p3 = por %p3235_p0, %p3234_p13 }
 0x575   : > { %p3232_p12 = pneg %p3231_p10 }
 0x577   : > { %p3237_p5 = pnand %p3236_p3, %p3232_p12 }
 0x57d   : > { %v970_v35 = vpop.xlane.xlu2 %969 }
 0x57e   : > { %2993 = vrcp.f32 %v970_v35  ;;  %v2409_v35 = vor.u32 %v2677_v23, %v2408_v33  ;;  %v2530_v33 = vld [vmem:[#allocation15 + $0x98] sm:$0xf0] }
 0x57f   : > { %2995 = vrcp.f32 %v973_v37  ;;  %v2400_v37 = vld [vmem:[#allocation15 + $0x80] sm:$0xf] }
 0x580   : > { %2997 = vrcp.f32 %v3367_v3  ;;  %1519 = vmatpush.bf16.msrb.mxu3 %v2409_v35  ;;  %v2552_v3 = vld [vmem:[#allocation15 + $0xe8] sm:$0xf] }
 0x584   : > { %v2994_v38 = vpop.eup %2993 }
 0x585   : > { %v2996_v42 = vpop.eup %2995  ;;  %v1090_v45 = vpop.permute.xlu2 %1089 }
 0x586   : > { %v2998_v4 = vpop.eup %2997 }
 0x587   : > { %v1360_v5 = vmul.f32 128.0, %v2998_v4  ;;  %vm1364_vm1 = vweird.f32 %v2998_v4 }
 0x588   : > { %v999_v39 = vpop.f32.mrf.mxu1 }
 0x589   : > { %v1006_v40 = vmul.f32 %v2994_v38, %v999_v39  ;;  %v1361_v20 = vsub.f32 1.0, %v1360_v5  ;;  %v2675_v38 = vld [vmem:[#allocation15 + $0x8c] sm:$0xf0]  ;;  %v2674_v39 = vld [vmem:[#allocation15 + $0x84] sm:$0xf] }
 0x58b   : > { %1008 = vst.msk [vmem:[#allocation5] sm:$0xff] %vm932_vm13, %v1006_v40  ;;  %v1362_v22 = vmul.f32 %v2998_v4, %v1361_v20  ;;  %v2401_v40 = vor.u32 %v2675_v38, %v2400_v37  ;;  %v2536_v20 = vld [vmem:[#allocation15 + $0xa8] sm:$0xf]  ;;  %v2704_v37 = vld [vmem:[#allocation15 + $0x6c] sm:$0xf]  ;;  %v2521_v38 = vor.u32 %v2705_v24, %v2520_v36  ;;  %v2690_v24 = vld [vmem:[#allocation17 + $0x40] sm:$0xff] }
 0x58c   : > { %1094 = vst.msk [vmem:[#allocation5] sm:$0xff] %vm1093_vm14, %v1088_v41  ;;  %v2402_v41 = vld [vmem:[#allocation15 + $0x90] sm:$0xf0]  ;;  %v2691_v36 = vld [vmem:[#allocation17 + $0x48] sm:$0xff] }
 0x58d   : > { %v1363_v25 = vadd.f32 %v2998_v4, %v1362_v22  ;;  %1520 = vmatpush.bf16.msrb.mxu3 %v2401_v40  ;;  %v2537_v22 = vor.u32 %v2709_v21, %v2536_v20  ;;  %v2695_v21 = vld [vmem:[#allocation17 + $0x68] sm:$0xff] }
 0x58e   : > { %1695 = vmatpush.bf16.msra.mxu1 %v2695_v21 }
 0x58f   : > { %v3760_v15 = vsel %vm1364_vm1, %v2998_v4, %v1363_v25  ;;  %v2713_v4 = vld [vmem:[#allocation15 + $0xf4] sm:$0xf0]  ;;  %v2538_v25 = vld [vmem:[#allocation15 + $0xb8] sm:$0xf0] }
 0x590   : > { %v1001_v43 = vpop.f32.mrf.mxu1  ;;  %v2553_v6 = vor.u32 %v2713_v4, %v2552_v3 }
 0x591   : > { %v1007_v44 = vmul.f32 %v2996_v42, %v1001_v43  ;;  %v2405_v42 = vor.u32 %v2674_v39, %v2402_v41  ;;  %v2392_v43 = vld [vmem:[#allocation15 + $0x60] sm:$0xf]  ;;  %v2522_v39 = vld [vmem:[#allocation15 + $0x78] sm:$0xf0]  ;;  %v2512_v41 = vld [vmem:[#allocation15 + $0x48] sm:$0xf] }
 0x592   : > { %v2525_v40 = vor.u32 %v2704_v37, %v2522_v39  ;;  %v2729_v37 = vld [vmem:[#allocation17 + $0xf8] sm:$0xff]  ;;  %v2728_v39 = vld [vmem:[#allocation17 + $0xf0] sm:$0xff] }
 0x593   : > { %1009 = vst.msk [vmem:[#allocation5 + $0x8] sm:$0xff] %vm932_vm13, %v1007_v44  ;;  %1534 = vmatpush.bf16.msra.mxu0 %v2405_v42  ;;  %v2673_v44 = vld [vmem:[#allocation15 + $0x6c] sm:$0xf0]  ;;  %v2703_v42 = vld [vmem:[#allocation15 + $0x54] sm:$0xf0] }
 0x594   : > { %1095 = vst.msk [vmem:[#allocation5 + $0x8] sm:$0xff] %vm1093_vm14, %v1090_v45  ;;  %v2672_v45 = vld [vmem:[#allocation15 + $0x64] sm:$0xf]  ;;  %v2393_v46 = vor.u32 %v2673_v44, %v2392_v43  ;;  %v2702_v43 = vld [vmem:[#allocation15 + $0x4c] sm:$0xf] }
 0x595   : > { %v2397_v48 = vor.u32 %v2672_v45, %v2394_v47  ;;  %v2513_v45 = vor.u32 %v2703_v42, %v2512_v41  ;;  %v2721_v41 = vld [vmem:[#allocation17 + $0xb8] sm:$0xff]  ;;  %v2727_v42 = vld [vmem:[#allocation17 + $0xe8] sm:$0xff] }
 0x596   : > { %1521 = vmatpush.bf16.msrb.mxu3 %v2393_v46  ;;  %v2514_v46 = vld [vmem:[#allocation15 + $0x58] sm:$0xf0] }
 0x597   : > { %1535 = vmatpush.bf16.msra.mxu0 %v2397_v48  ;;  %v2517_v48 = vor.u32 %v2702_v43, %v2514_v46  ;;  %v2720_v43 = vld [vmem:[#allocation17 + $0xb0] sm:$0xff]  ;;  %v2725_v46 = vld [vmem:[#allocation17 + $0xd8] sm:$0xff] }
 0x5a2   : > { %v1260_v54 = vpop.permute.xlu2 %1259 }
 0x5ce   : > { %v1174_v52 = vpop.permute.xlu1 %1173 }
 0x5cf   : > { %1180 = vst.msk [vmem:[#allocation5] sm:$0xff] %vm1179_vm15, %v1174_v52  ;;  %v2385_v52 = vor.u32 %v2671_v50, %v2384_v49  ;;  %v2504_v49 = vld [vmem:[#allocation15 + $0x28] sm:$0xf]  ;;  %v2701_v50 = vld [vmem:[#allocation15 + $0x34] sm:$0xf0] }
 0x5d0   : > { %1266 = vst.msk [vmem:[#allocation5] sm:$0xff] %vm1265_vm0, %v1260_v54  ;;  %v2386_v54 = vld [vmem:[#allocation15 + $0x50] sm:$0xf0] }
 0x5d1   : > { %1522 = vmatpush.bf16.msrb.mxu3 %v2385_v52  ;;  %v2506_v52 = vld [vmem:[#allocation15 + $0x38] sm:$0xf0] }
 0x5d6   : > { %v1176_v55 = vpop.permute.xlu0 %1175 }
 0x5d7   : > { %1181 = vst.msk [vmem:[#allocation5 + $0x8] sm:$0xff] %vm1179_vm15, %v1176_v55  ;;  %v1268_v57 = vld [vmem:[#allocation5] sm:$0xff]  ;;  %v2389_v55 = vor.u32 %v2670_v51, %v2386_v54 }
 0x5d8   : > { %v2700_v51 = vld [vmem:[#allocation15 + $0x2c] sm:$0xf] }
 0x5d9   : > { %1536 = vmatpush.bf16.msra.mxu0 %v2389_v55 }
 0x5de   : > { %v1262_v56 = vpop.permute.xlu0 %1261 }
 0x5df   : > { %1267 = vst.msk [vmem:[#allocation5 + $0x8] sm:$0xff] %vm1265_vm0, %v1262_v56  ;;  %v2376_v56 = vld [vmem:[#allocation15 + $0x20] sm:$0xf] }
 0x5e6   : > { %v1269_v58 = vld [vmem:[#allocation5 + $0x8] sm:$0xff] }
 0x5e7   : > { %v1270_v53 = vpack.c.bf16 %v1269_v58, %v1268_v57  ;;  %v2669_v57 = vld [vmem:[#allocation15 + $0x2c] sm:$0xf0]  ;;  %v2668_v58 = vld [vmem:[#allocation15 + $0x24] sm:$0xf] }
 0x5e9   : > { %1347 = vmatmul.bf16.vlgmr.msrb.gmra.mxu1 %v1270_v53  ;;  %v2377_v53 = vor.u32 %v2669_v57, %v2376_v56  ;;  %v2505_v57 = vor.u32 %v2701_v50, %v2504_v49  ;;  %v2717_v49 = vld [vmem:[#allocation17 + $0x98] sm:$0xff]  ;;  %v2723_v50 = vld [vmem:[#allocation17 + $0xc8] sm:$0xff] }
 0x5eb   : > { %1523 = vmatpush.bf16.msrb.mxu3 %v2377_v53  ;;  %v2496_v53 = vld [vmem:[#allocation15 + $0x8] sm:$0xf] }
 0x666   : > { %v1348_v61 = vpop.f32.mrf.mxu1 }
 0x667   : > { %v1349_v62 = vadd.f32 %v2961_v59, %v1348_v61  ;;  %v2368_v61 = vld [vmem:[#allocation15] sm:$0xf] }
 0x669   : > { %v3754_v63 = vadd.f32 %v1349_v62, %v901_v60  ;;  %v2667_v62 = vld [vmem:[#allocation15 + $0xc] sm:$0xf0] }
 0x66b   : > { %1355 = vadd.xlane.f32.xlu1 %v3754_v63 }
 0x66e   : > { %v1350_v10 = vpop.f32.mrf.mxu1 }
 0x66f   : > { %v1351_v1 = vadd.f32 %v2961_v59, %v1350_v10  ;;  %v2378_v59 = vld [vmem:[#allocation15 + $0x30] sm:$0xf0]  ;;  %v2369_v10 = vor.u32 %v2667_v62, %v2368_v61  ;;  %v2698_v61 = vld [vmem:[#allocation15 + $0xc] sm:$0xf]  ;;  %v2498_v62 = vld [vmem:[#allocation15 + $0x18] sm:$0xf0] }
 0x670   : > { %v2381_v60 = vor.u32 %v2668_v58, %v2378_v59  ;;  %v2509_v58 = vor.u32 %v2700_v51, %v2506_v52  ;;  %v2699_v59 = vld [vmem:[#allocation15 + $0x14] sm:$0xf0]  ;;  %v2716_v51 = vld [vmem:[#allocation17 + $0x90] sm:$0xff]  ;;  %v2722_v52 = vld [vmem:[#allocation17 + $0xc0] sm:$0xff] }
 0x671   : > { %v3757_v2 = vadd.f32 %v1351_v1, %v902_v0  ;;  %v2666_v0 = vld [vmem:[#allocation15 + $0x4] sm:$0xf]  ;;  %v2370_v1 = vld [vmem:[#allocation15 + $0x10] sm:$0xf0]  ;;  %1524 = vmatpush.bf16.msrb.mxu3 %v2369_v10  ;;  %v2501_v10 = vor.u32 %v2698_v61, %v2498_v62 }
 0x672   : > { %1537 = vmatpush.bf16.msra.mxu0 %v2381_v60  ;;  %v2373_v5 = vor.u32 %v2666_v0, %v2370_v1  ;;  %v2497_v0 = vor.u32 %v2699_v59, %v2496_v53 }
 0x673   : > { %1357 = vadd.xlane.f32.xlu2 %v3757_v2 }
 0x675   : > { %1811 = vmatpush.bf16.msra.mxu3 %v2553_v6 }
 0x676   : > { %1538 = vmatpush.bf16.msra.mxu0 %v2373_v5 }
 0x679   : > { %1812 = vmatpush.bf16.msra.mxu3 %v2545_v18 }
 0x67a   : > { %1825 = vmatpush.bf16.msrb.mxu0 %v2557_v9 }
 0x67d   : > { %1813 = vmatpush.bf16.msra.mxu3 %v2537_v22 }
 0x67e   : > { %1826 = vmatpush.bf16.msrb.mxu0 %v2549_v14  ;;  %v2962_v14 = vld [vmem:[%s3905_s12] ss:$0 sm:$0xff] }
 0x6de   : > { %v1356_v26 = vpop.xlane.xlu1 %1355 }
 0x6df   : > { %v1366_v27 = vmul.f32 %v3760_v15, %v1356_v26  ;;  %v2541_v26 = vor.u32 %v2708_v11, %v2538_v25  ;;  %v2687_v11 = vld [vmem:[#allocation17 + $0x28] sm:$0xff] }
 0x6e0   : > { %1681 = vmatpush.bf16.msra.mxu2 %v2687_v11 }
 0x6e1   : > { %v3764_v28 = vsub.f32 %v3754_v63, %v1366_v27  ;;  %v2528_v27 = vld [vmem:[#allocation15 + $0x88] sm:$0xf]  ;;  %1827 = vmatpush.bf16.msrb.mxu0 %v2541_v26 }
 0x6e3   : > { %v1370_v29 = vmul.f32 %v3764_v28, %v3764_v28 }
 0x6e5   : > { %1372 = vadd.xlane.f32.xlu0 %v1370_v29  ;;  %v2707_v29 = vld [vmem:[#allocation15 + $0x94] sm:$0xf0] }
 0x6e6   : > { %v1358_v16 = vpop.xlane.xlu2 %1357 }
 0x6e7   : > { %v1367_v30 = vmul.f32 %v3760_v15, %v1358_v16  ;;  %v2706_v16 = vld [vmem:[#allocation15 + $0x8c] sm:$0xf] }
 0x6e8   : > { %v2533_v34 = vor.u32 %v2706_v16, %v2530_v33  ;;  %v2694_v16 = vld [vmem:[#allocation17 + $0x60] sm:$0xff] }
 0x6e9   : > { %v3770_v31 = vsub.f32 %v3757_v2, %v1367_v30  ;;  %1696 = vmatpush.bf16.msra.mxu1 %v2694_v16 }
 0x6ea   : > { %1828 = vmatpush.bf16.msrb.mxu0 %v2533_v34  ;;  %v2685_v34 = vld [vmem:[#allocation17 + $0x18] sm:$0xff] }
 0x6eb   : > { %v1371_v32 = vmul.f32 %v3770_v31, %v3770_v31 }
 0x6ed   : > { %1374 = vadd.xlane.f32.xlu1 %v1371_v32  ;;  %v2529_v32 = vor.u32 %v2707_v29, %v2528_v27  ;;  %v2963_v27 = vld [vmem:[#allocation14] ss:$0 sm:$0xff] }
 0x6ee   : > { %1829 = vmatpush.bf16.msrb.mxu0 %v2525_v40  ;;  %v2682_v40 = vld [vmem:[#allocation17] sm:$0xff] }
 0x6ef   : > { %1814 = vmatpush.bf16.msra.mxu3 %v2529_v32 }
 0x6f2   : > { %1830 = vmatpush.bf16.msrb.mxu0 %v2517_v48  ;;  %v2724_v48 = vld [vmem:[#allocation17 + $0xd0] sm:$0xff] }
 0x6f3   : > { %1815 = vmatpush.bf16.msra.mxu3 %v2521_v38  ;;  %v2683_v38 = vld [vmem:[#allocation17 + $0x8] sm:$0xff] }
 0x6f6   : > { %1831 = vmatpush.bf16.msrb.mxu0 %v2509_v58 }
 0x6f7   : > { %1816 = vmatpush.bf16.msra.mxu3 %v2513_v45  ;;  %v2719_v45 = vld [vmem:[#allocation17 + $0xa8] sm:$0xff] }
 0x6fa   : > { %1832 = vmatpush.bf16.msrb.mxu0 %v2501_v10 }
 0x6fb   : > { %1817 = vmatpush.bf16.msra.mxu3 %v2505_v57  ;;  %v2714_v57 = vld [vmem:[#allocation17 + $0x80] sm:$0xff] }
 0x6ff   : > { %1818 = vmatpush.bf16.msra.mxu3 %v2497_v0 }
 0x758   : > { %v1373_v30 = vpop.xlane.xlu0 %1372 }
 0x759   : > { %v1376_v23 = vmul.f32 %v1373_v30, %v3760_v15 }
 0x75b   : > { %v1378_v35 = vadd.f32 1e-05, %v1376_v23  ;;  %v2693_v23 = vld [vmem:[#allocation17 + $0x58] sm:$0xff] }
 0x75c   : > { %1697 = vmatpush.bf16.msra.mxu1 %v2693_v23 }
 0x75d   : > { %2999 = vrsqrt.f32 %v1378_v35  ;;  %vm1386_vm3 = vweird.f32 %v1378_v35 }
 0x760   : > { %v1375_v44 = vpop.xlane.xlu1 %1374 }
 0x761   : > { %v1377_v47 = vmul.f32 %v1375_v44, %v3760_v15  ;;  %v2726_v44 = vld [vmem:[#allocation17 + $0xe0] sm:$0xff] }
 0x763   : > { %v3000_v54 = vpop.eup %2999  ;;  %v1379_v55 = vadd.f32 1e-05, %v1377_v47  ;;  %v2718_v47 = vld [vmem:[#allocation17 + $0xa0] sm:$0xff] }
 0x764   : > { %v1381_v56 = vmul.f32 %v3000_v54, %v1378_v35  ;;  %vm1387_vm2 = vweird.f32 %v3000_v54  ;;  %v2692_v35 = vld [vmem:[#allocation17 + $0x50] sm:$0xff] }
 0x765   : > { %3001 = vrsqrt.f32 %v1379_v55  ;;  %vm1388_vm4 = vmor %vm1386_vm3, %vm1387_vm2  ;;  %vm1396_vm6 = vweird.f32 %v1379_v55  ;;  %1698 = vmatpush.bf16.msra.mxu1 %v2692_v35 }
 0x766   : > { %v1382_v60 = vmul.f32 %v3000_v54, %v1381_v56 }
 0x768   : > { %v1383_v15 = vmul.f32 0.5, %v1382_v60 }
 0x769   : > { %1699 = vmatpush.bf16.msra.mxu1 %v2691_v36 }
 0x76a   : > { %v1384_v1 = vsub.f32 1.5, %v1383_v15 }
 0x76b   : > { %v3002_v3 = vpop.eup %3001 }
 0x76c   : > { %v1385_v4 = vmul.f32 %v3000_v54, %v1384_v1  ;;  %v1391_v5 = vmul.f32 %v3002_v3, %v1379_v55  ;;  %vm1397_vm5 = vweird.f32 %v3002_v3  ;;  %v1431_v55 = vld [vmem:[%s3906_s28] sm:$0x3]  ;;  %s2034_s28 = sshll.u32 %s3630_s10, 4  ;;  %s2035_s28 = int_to_ptr.vmem [resolvable:$true] %s2034_s28 }
 0x76d   : > { %vm1398_vm7 = vmor %vm1396_vm6, %vm1397_vm5  ;;  %1700 = vmatpush.bf16.msra.mxu1 %v2690_v24  ;;  %v1434_v58 = vperm.slane %v1431_v55, 1  ;;  %v1433_v61 = vperm.slane %v1431_v55, 0  ;;  %v2964_v24 = vld [vmem:[%s3909_s14] ss:$0 sm:$0xff] }
 0x76e   : > { %v1392_v6 = vmul.f32 %v3002_v3, %v1391_v5  ;;  %v1389_v9 = vsel %vm1388_vm4, %v3000_v54, %v1385_v4  ;;  %v2715_v54 = vld [vmem:[#allocation17 + $0x88] sm:$0xff]  ;;  %v1725_v5 = vld [vmem:[%s3907_s1 + $0x2] sm:$0x3] }
 0x76f   : > { %v1400_v19 = vmul.f32 %v1389_v9, %v3764_v28  ;;  %v2686_v28 = vld [vmem:[#allocation17 + $0x20] sm:$0xff] }
 0x770   : > { %v1393_v12 = vmul.f32 0.5, %v1392_v6  ;;  %1682 = vmatpush.bf16.msra.mxu2 %v2686_v28 }
 0x771   : > { %v1406_v26 = vmul.f32 %v2962_v14, %v1400_v19  ;;  %1987 = vmatpush.bf16.msrb.mxu1 %v2729_v37  ;;  %v1727_v19 = vperm.slane %v1725_v5, 0 }
 0x772   : > { %v1394_v18 = vsub.f32 1.5, %v1393_v12  ;;  %v1728_v12 = vperm.slane %v1725_v5, 1 }
 0x773   : > { %v1412_v30 = vadd.f32 %v2963_v27, %v1406_v26 }
 0x774   : > { %v1395_v20 = vmul.f32 %v3002_v3, %v1394_v18  ;;  %1683 = vmatpush.bf16.msra.mxu2 %v2685_v34 }
 0x775   : > { %1988 = vmatpush.bf16.msrb.mxu1 %v2728_v39 }
 0x776   : > { %v1399_v22 = vsel %vm1398_vm7, %v3002_v3, %v1395_v20 }
 0x777   : > { %v1401_v25 = vmul.f32 %v1399_v22, %v3770_v31  ;;  %v2684_v31 = vld [vmem:[#allocation17 + $0x10] sm:$0xff] }
 0x778   : > { %1684 = vmatpush.bf16.msra.mxu2 %v2684_v31 }
 0x779   : > { %v1407_v29 = vmul.f32 %v2962_v14, %v1401_v25  ;;  %1989 = vmatpush.bf16.msrb.mxu1 %v2727_v42 }
 0x77b   : > { %v1413_v32 = vadd.f32 %v2963_v27, %v1407_v29 }
 0x77c   : > { %1685 = vmatpush.bf16.msra.mxu2 %v2683_v38 }
 0x77d   : > { %v1414_v33 = vpack.c.bf16 %v1413_v32, %v1412_v30  ;;  %1990 = vmatpush.bf16.msrb.mxu1 %v2726_v44 }
 0x77f   : > { %1525 = vmatmul.bf16.vlgmr.msrb.gmra.mxu3 %v1414_v33  ;;  %1539 = vmatmul.bf16.vlgmr.msra.gmra.mxu0 %v1414_v33 }
 0x780   : > { %1686 = vmatpush.bf16.msra.mxu2 %v2682_v40 }
 0x781   : > { %1991 = vmatpush.bf16.msrb.mxu1 %v2725_v46 }
 0x784   : > { %1973 = vmatpush.bf16.msrb.mxu2 %v2721_v41 }
 0x785   : > { %1992 = vmatpush.bf16.msrb.mxu1 %v2724_v48 }
 0x788   : > { %1974 = vmatpush.bf16.msrb.mxu2 %v2720_v43 }
 0x789   : > { %1993 = vmatpush.bf16.msrb.mxu1 %v2723_v50 }
 0x78c   : > { %1975 = vmatpush.bf16.msrb.mxu2 %v2719_v45 }
 0x78d   : > { %1994 = vmatpush.bf16.msrb.mxu1 %v2722_v52 }
 0x78f   : > { %1819 = vmatmul.bf16.vlgmr.msra.gmra.mxu3 %v1414_v33  ;;  %1833 = vmatmul.bf16.vlgmr.msrb.gmra.mxu0 %v1414_v33 }
 0x790   : > { %1976 = vmatpush.bf16.msrb.mxu2 %v2718_v47 }
 0x794   : > { %1977 = vmatpush.bf16.msrb.mxu2 %v2717_v49 }
 0x798   : > { %1978 = vmatpush.bf16.msrb.mxu2 %v2716_v51 }
 0x79c   : > { %1979 = vmatpush.bf16.msrb.mxu2 %v2715_v54 }
 0x7a0   : > { %1980 = vmatpush.bf16.msrb.mxu2 %v2714_v57 }
 0x7fc   : > { %v1540_v56 = vpop.f32.mrf.mxu0 }
 0x7fd   : > { %v1541_v59 = vadd.f32 %v1540_v56, %v1434_v58 }
 0x7ff   : > { %v1546_v15 = vmax.f32 %v1541_v59, 0.0 }
 0x802   : > { %v1526_v53 = vpop.f32.mrf.mxu3 }
 0x803   : > { %v1527_v10 = vadd.f32 %v1526_v53, %v1433_v61 }
 0x804   : > { %v1542_v60 = vpop.f32.mrf.mxu0 }
 0x805   : > { %v1543_v62 = vadd.f32 %v1542_v60, %v1434_v58  ;;  %v1545_v7 = vmax.f32 %v1527_v10, 0.0 }
 0x807   : > { %v1548_v0 = vmax.f32 %v1543_v62, 0.0 }
 0x809   : > { %v1550_v1 = vpack.c.bf16 %v1548_v0, %v1546_v15 }
 0x80a   : > { %v1528_v3 = vpop.f32.mrf.mxu3 }
 0x80b   : > { %v1529_v4 = vadd.f32 %v1528_v3, %v1433_v61  ;;  %1701 = vmatmul.bf16.vlgmr.msra.gmra.mxu1 %v1550_v1 }
 0x80c   : > { %v1834_v6 = vpop.f32.mrf.mxu0 }
 0x80d   : > { %v1547_v8 = vmax.f32 %v1529_v4, 0.0  ;;  %v1835_v17 = vadd.f32 %v1834_v6, %v1728_v12 }
 0x80f   : > { %v1549_v9 = vpack.c.bf16 %v1547_v8, %v1545_v7  ;;  %v1840_v20 = vmax.f32 %v1835_v17, 0.0 }
 0x811   : > { %1687 = vmatmul.bf16.vlgmr.msra.gmra.mxu2 %v1549_v9 }
 0x812   : > { %v1820_v13 = vpop.f32.mrf.mxu3 }
 0x813   : > { %v1821_v11 = vadd.f32 %v1820_v13, %v1727_v19 }
 0x814   : > { %v1836_v18 = vpop.f32.mrf.mxu0 }
 0x815   : > { %v1837_v14 = vadd.f32 %v1836_v18, %v1728_v12  ;;  %v1839_v27 = vmax.f32 %v1821_v11, 0.0 }
 0x817   : > { %v1842_v21 = vmax.f32 %v1837_v14, 0.0 }
 0x819   : > { %v1844_v22 = vpack.c.bf16 %v1842_v21, %v1840_v20 }
 0x81a   : > { %v1822_v25 = vpop.f32.mrf.mxu3 }
 0x81b   : > { %v1823_v26 = vadd.f32 %v1822_v25, %v1727_v19  ;;  %1995 = vmatmul.bf16.vlgmr.msrb.gmra.mxu1 %v1844_v22 }
 0x81d   : > { %v1841_v29 = vmax.f32 %v1823_v26, 0.0 }
 0x81f   : > { %v1843_v16 = vpack.c.bf16 %v1841_v29, %v1839_v27 }
 0x821   : > { %1981 = vmatmul.bf16.vlgmr.msrb.gmra.mxu2 %v1843_v16 }
 0x888   : > { %v1702_v28 = vpop.f32.mrf.mxu1 }
 0x890   : > { %v1704_v32 = vpop.f32.mrf.mxu1 }
 0x894   : > { %v1688_v30 = vpop.f32.mrf.mxu2 }
 0x895   : > { %v1703_v35 = vadd.f32 %v1702_v28, %v1688_v30 }
 0x898   : > { %v1996_v23 = vpop.f32.mrf.mxu1 }
 0x89c   : > { %v1690_v33 = vpop.f32.mrf.mxu2 }
 0x89d   : > { %v1705_v41 = vadd.f32 %v1704_v32, %v1690_v33 }
 0x8a0   : > { %v1998_v39 = vpop.f32.mrf.mxu1 }
 0x8a4   : > { %v1982_v34 = vpop.f32.mrf.mxu2 }
 0x8a5   : > { %v1997_v31 = vadd.f32 %v1996_v23, %v1982_v34 }
 0x8a7   : > { %v2003_v36 = vadd.f32 %v1997_v31, %v1703_v35 }
 0x8a9   : > { %2005 = vst [vmem:[#allocation5] sm:$0xff] %v2003_v36  ;;  %v2009_v37 = vadd.f32 %v2003_v36, %v3754_v63 }
 0x8ab   : > { %v2015_v38 = vadd.f32 %v2964_v24, %v2009_v37 }
 0x8ac   : > { %v1984_v40 = vpop.f32.mrf.mxu2 }
 0x8ad   : > { %v1999_v42 = vadd.f32 %v1998_v39, %v1984_v40  ;;  %2017 = vst [vmem:[%s3630_s10] sm:$0xff] %v2015_v38 }
 0x8af   : > { %v2004_v43 = vadd.f32 %v1999_v42, %v1705_v41 }
 0x8b1   : > { %2006 = vst [vmem:[#allocation5 + $0x8] sm:$0xff] %v2004_v43  ;;  %v2010_v63 = vadd.f32 %v2004_v43, %v3757_v2 }
 0x8b3   : > { %v2016_v44 = vadd.f32 %v2964_v24, %v2010_v63 }
 0x8b5   : > { %2018 = vst [vmem:[%s3630_s10 + $0x8] sm:$0xff] %v2016_v44 }
 0x8b6   : > { %3240 = shalt.err (!%p3237_p5)
}
 0x8b7   : > { %s3368_s3 = smov 128   ;;  %s3369_s10 = smov 8  }
 0x8b8   : > { %2797 = dma.vmem_to_hbm [thread:$0]  (%p3584_p8), %s2035_s28, 256, %s2037_s27, %s2020_s16, %s3368_s3, %s3368_s3, %s3369_s10  }
 0x8b9 PF: > { %p2839_p6 = scmp.ge.s32.totalorder %s3347_s13, 2  ;;  %s2051_s15 = sand.u32 1, %s3307_s21  }
 0x8ba   : > { %s2052_s6 = scalar_lea.sflag [#allocation8], %s2051_s15 }
 0x8bb   : > { %p2823_p7 = pnand %p2839_p6, %p3594_p9 }
 0x8bd   : > { %p2824_p11 = pneg %p2823_p7 }
 0x8bf   : > { %3302 = dma.done.wait (%p2824_p11), %s2052_s6, 256  }
 0x8c0   : > { %3304 = vsyncadd (%p2824_p11), %s2052_s6, 4294967040  ;;  %s31_s13 = sadd.s32 1, %s3347_s13   ;;  %s3911_s17 = sld [smem:[#allocation26_spill]] }
 0x8c1   : > { %p28_p2 = scmp.ge.s32.totalorder %s31_s13, 6   ;;  %s3912_s12 = sld [smem:[#allocation27_spill]] }
 0x8c2   : > { %s3913_s21 = smov %s3311_s22  ;;  %s3914_s22 = smov %s3315_s23 }
 0x8c3   : > { %s3915_s23 = smov %s3592_s19  ;;  %s3916_s24 = smov %s3323_s25 }
 0x8c4   : > { %s3917_s25 = smov %s3327_s26  ;;  %s3918_s26 = smov %s3589_s11 }
 0x8c5   : > { %s3919_s27 = smov %s3339_s29  ;;  %s3920_s28 = smov %s3343_s30 }
 0x8c6   : > { %s3921_s29 = smov %s3911_s17  ;;  %30 = sbr.rel (!%p28_p2) target bundleno = 25 (0x19), region = 143 }
 0x8c7   : > { %s3922_s30 = smov %s3912_s12 }
 0x8cb   :  { %2058 = vsyncpa [#allocation7], 1 }
 0x8cc   :  { %2060 = vsyncpa [#allocation7 + $0x1], 1 }
 0x8cd   :  { %2061 = vsyncpa [#allocation10], 1 }
 0x8ce   :  { %2062 = vsyncpa [#allocation13], 1 }
 0x8cf   :  { %2063 = vsyncpa [#allocation16], 1 }
 0x8d0   :  { %2064 = vsyncpa [#allocation8], 1 }
 0x8d1   :  { %2066 = vsyncpa [#allocation8 + $0x1], 1 }

</bundles_post_ra>
